<compile_context>
chip_gen: v7x
topology: tpu7x:2x2x1
jax: 0.10.0
libtpu: 0.0.40
codegen_flags: <defaults>
</compile_context>

<pallas_src>
import functools

import jax
import jax.numpy as jnp
from jax.experimental import pallas as pl
from jax.experimental.pallas import tpu as pltpu

EPS = 1e-8


def _gln_stats(v):
    """Global mean/variance of v = (C, T).  sum(v) and sum(v*v) are fused into a single
    lane-reduce pass over a stacked (2C, T) tensor, then a cheap sublane reduce.
    One-pass E[x^2]-mean^2 (clamped); post-matmul activations are ~zero-mean here."""
    C = v.shape[0]
    n = float(v.shape[0] * v.shape[1])
    st = jnp.concatenate([v, v * v], axis=0)              # (2C, T)
    col = jnp.sum(st, axis=1, keepdims=True)              # (2C, 1): one lane-reduce pass
    mean = jnp.sum(col[:C]) / n
    ex2 = jnp.sum(col[C:]) / n
    var = jnp.maximum(ex2 - mean * mean, 0.0)
    return mean, var


def _tcn_fused_kernel(alphas_ref, x_ref, w1_ref, w2f_ref, pch_ref, bias2_ref, o_ref,
                      *, kernel_size, dilations, paddings):
    x = x_ref[...]                                         # (Cin, T) f32
    T = x.shape[1]
    H = w1_ref.shape[1]
    col = jax.lax.broadcasted_iota(jnp.int32, (H, T), 1)   # lane (time) index, hoisted

    for blk in range(len(dilations)):                      # static unroll over blocks
        a1 = alphas_ref[blk, 0]
        a2 = alphas_ref[blk, 1]
        dil = dilations[blk]
        pad = paddings[blk]

        resid = x

        # ---- 1x1 conv on the MXU (bf16 operands, f32 accumulation) + PReLU 1 ----
        h = jnp.dot(w1_ref[blk], x.astype(jnp.bfloat16),
                    preferred_element_type=jnp.float32)    # (H, T) f32
        h = jnp.where(h >= 0, h, a1 * h)

        # ---- gLN 1: fused sum/sumsq pass, scalar rsqrt (EUP), gamma folded into scale ----
        mean1, var1 = _gln_stats(h)
        inv1 = jax.lax.rsqrt(var1 + EPS)
        pch = pch_ref[blk]                                 # (H, 2+P): [gamma1 | beta1 | wdw]
        g1 = pch[:, 0:1]
        b1 = pch[:, 1:2]
        wdw = pch[:, 2:2 + kernel_size]                    # depthwise weights, hoisted
        scale1 = g1 * inv1
        shift1 = b1 - scale1 * mean1
        h = scale1 * h + shift1

        # ---- Depthwise dilated conv (stride 1, zero pad) via XLU rolls + lane masks ----
        # y[c, t] = sum_k wdw[c, k] * h[c, t + k*dil - pad]   (zero outside [0, T))
        y = jnp.zeros_like(h)
        for k in range(kernel_size):                       # static unroll
            offs = k * dil - pad                           # python int
            tap = h if offs % T == 0 else pltpu.roll(h, shift=(-offs) % T, axis=1)
            if offs < 0:
                tap = jnp.where(col >= -offs, tap, 0.0)
            elif offs > 0:
                tap = jnp.where(col < T - offs, tap, 0.0)
            y = y + wdw[:, k:k + 1] * tap

        # ---- PReLU 2 + gLN 2 (gamma2/beta2 already folded into the pointwise conv) ----
        y = jnp.where(y >= 0, y, a2 * y)
        mean2, var2 = _gln_stats(y)
        inv2 = jax.lax.rsqrt(var2 + EPS)
        z = ((y - mean2) * inv2).astype(jnp.bfloat16)      # (H, T) bf16

        # ---- Pointwise 1x1 conv (MXU) + folded gLN2 bias + residual ----
        out = jnp.dot(w2f_ref[blk], z, preferred_element_type=jnp.float32)  # (Cin, T)
        x = out + bias2_ref[blk] + resid                   # next block's input (stays in VMEM)

    o_ref[...] = x


def _derive_vmem_limit(Cin, H, T, X, P):
    """Scoped-VMEM limit derived from actual sizes: x/out double buffers + all-block weights
    + a generous bound on live intermediates, with 2x margin.  Returns None (use the
    per-generation default) when even the most conservative default (16 MiB) suffices."""
    f32, bf16 = 4, 2
    io = 2 * (2 * Cin * T * f32)                           # x + out tiles, double-buffered
    wts = 2 * X * (2 * H * Cin * bf16 + H * (2 + P) * f32 + Cin * f32)
    live = (3 * Cin + 8 * H) * T * f32                     # residual, h, y, stats stack, taps
    need = 2 * (io + wts + live) + (2 << 20)               # headroom for Mosaic internals
    if need <= (16 << 20):
        return None                                        # default limit is already enough
    return int(min(need, 60 << 20))                        # stay inside v7x's 64 MiB VMEM


def tcn_block(x, block_params, *, kernel_size):
    """TCN_block forward: X stacked TemporalBlocks fused into ONE pallas_call.
    x: (B, Cin, T) float32 -> (B, Cin, T) float32."""
    B, Cin, T = x.shape
    X = len(block_params)
    H = block_params[0]["w1"].shape[0]
    P = kernel_size
    dilations = tuple(2 ** i for i in range(X))
    paddings = tuple((P - 1) * d // 2 for d in dilations)
    for d, pad in zip(dilations, paddings):
        L_out = T + 2 * pad - d * (P - 1)
        assert L_out == T, "residual add requires a length-preserving conv (stride 1)"
        assert pad < T and d * (P - 1) < T
    # NOTE: best performance when T is a multiple of 128 (lane-dense loads/stores).

    # Offline folds & stacking (tiny XLA ops; constant-folded under jit):
    #   W2' = W2 * diag(gamma2),  bias2 = W2 @ beta2   -> gLN2 affine merges into the matmul
    #   per-hidden-channel vectors packed into one (X, H, 2+P) input: [gamma1 | beta1 | wdw]
    alphas = jnp.stack([p["alphas"] for p in block_params])                    # (X, 2)
    w1 = jnp.stack([p["w1"] for p in block_params]).astype(jnp.bfloat16)       # (X, H, Cin)
    w2f = jnp.stack([p["w2"] * p["g2"][:, 0][None, :]
                     for p in block_params]).astype(jnp.bfloat16)              # (X, Cin, H)
    pch = jnp.stack([jnp.concatenate([p["g1"], p["b1"], p["wdw"]], axis=1)
                     for p in block_params])                                   # (X, H, 2+P)
    bias2 = jnp.stack([p["w2"] @ p["b2"] for p in block_params])               # (X, Cin, 1)

    kernel = functools.partial(_tcn_fused_kernel, kernel_size=P,
                               dilations=dilations, paddings=paddings)

    full = lambda shape: pl.BlockSpec(shape, lambda b: (0,) * len(shape))

    return pl.pallas_call(
        kernel,
        out_shape=jax.ShapeDtypeStruct((B, Cin, T), jnp.float32),
        grid=(B,),
        in_specs=[
            pl.BlockSpec(memory_space=pltpu.MemorySpace.SMEM),               # alphas (X, 2)
            pl.BlockSpec((pl.Squeezed(), Cin, T), lambda b: (b, 0, 0)),      # x
            full((X, H, Cin)),                                               # w1 (bf16)
            full((X, Cin, H)),                                               # W2*diag(g2) (bf16)
            full((X, H, 2 + P)),                                             # [g1|b1|wdw] (f32)
            full((X, Cin, 1)),                                               # W2 @ b2 (f32)
        ],
        out_specs=pl.BlockSpec((pl.Squeezed(), Cin, T), lambda b: (b, 0, 0)),
        compiler_params=pltpu.CompilerParams(
            dimension_semantics=("parallel",),      # batch grid shards across v7x's 2 TCs
            vmem_limit_bytes=_derive_vmem_limit(Cin, H, T, X, P),
        ),
    )(alphas, x, w1, w2f, pch, bias2)


# ----------------------------- pure-JAX reference ------------------------------------
def temporal_block_ref(x, p, *, kernel_size, padding, dilation):
    """Mirrors the PyTorch module (bf16 MXU operands match the kernel's precision choice)."""
    def gln(y, gamma, beta):
        mean = y.mean(axis=(1, 2), keepdims=True)
        var = ((y - mean) ** 2).mean(axis=(1, 2), keepdims=True)
        return gamma[None] * (y - mean) / jnp.sqrt(var + EPS) + beta[None]

    def mm(w, a):
        return jnp.einsum("oc,bct->bot", w.astype(jnp.bfloat16), a.astype(jnp.bfloat16),
                          preferred_element_type=jnp.float32)

    a1, a2 = p["alphas"][0], p["alphas"][1]
    h = mm(p["w1"], x)
    h = jnp.where(h >= 0, h, a1 * h)
    h = gln(h, p["g1"], p["b1"])
    T = x.shape[2]
    hp = jnp.pad(h, ((0, 0), (0, 0), (padding, padding)))
    y = sum(p["wdw"][None, :, k:k + 1] * hp[:, :, k * dilation:k * dilation + T]
            for k in range(kernel_size))
    y = jnp.where(y >= 0, y, a2 * y)
    y = gln(y, p["g2"], p["b2"])
    out = mm(p["w2"], y)
    return out + x


def tcn_block_ref(x, block_params, *, kernel_size):
    for i, p in enumerate(block_params):
        dilation = 2 ** i
        padding = (kernel_size - 1) * dilation // 2
        x = temporal_block_ref(x, p, kernel_size=kernel_size,
                               padding=padding, dilation=dilation)
    return x


def init_params(key, in_channels, hidden_channels, kernel_size):
    """Parameters for one TemporalBlock(B=in_channels -> H=hidden_channels).
    PReLU alphas = 0.25 (torch default). gLN gamma/beta are initialized to 1/0 in the
    module; here they are slightly perturbed so the folded-gLN2 path is exercised."""
    k1, k2, k3, k4, k5, k6, k7 = jax.random.split(key, 7)
    s1 = 1.0 / jnp.sqrt(in_channels)
    sdw = 1.0 / jnp.sqrt(kernel_size)
    s2 = 1.0 / jnp.sqrt(hidden_channels)
    return {
        "alphas": jnp.array([0.25, 0.25], dtype=jnp.float32),
        "w1": jax.random.uniform(k1, (hidden_channels, in_channels), jnp.float32, -s1, s1),
        "g1": 1.0 + 0.05 * jax.random.normal(k4, (hidden_channels, 1), jnp.float32),
        "b1": 0.02 * jax.random.normal(k5, (hidden_channels, 1), jnp.float32),
        "wdw": jax.random.uniform(k2, (hidden_channels, kernel_size), jnp.float32, -sdw, sdw),
        "g2": 1.0 + 0.05 * jax.random.normal(k6, (hidden_channels, 1), jnp.float32),
        "b2": 0.02 * jax.random.normal(k7, (hidden_channels, 1), jnp.float32),
        "w2": jax.random.uniform(k3, (in_channels, hidden_channels), jnp.float32, -s2, s2),
    }


if __name__ == "__main__":
    # TCN_block(X, P, B, H).  Batch of 8 -> 8 grid steps (4 per TensorCore on v7x, even
    # split) so DMA is actually overlapped; T is a multiple of 128 for lane density.
    X_blocks, P = 3, 3
    Bsz, Bch, Hch, T = 8, 16, 32, 128

    key = jax.random.PRNGKey(0)
    kx, kp = jax.random.split(key)
    x = jax.random.normal(kx, (Bsz, Bch, T), dtype=jnp.float32)
    block_params = [init_params(k, Bch, Hch, P) for k in jax.random.split(kp, X_blocks)]

    out = jax.block_until_ready(tcn_block(x, block_params, kernel_size=P))
    ref = jax.block_until_ready(tcn_block_ref(x, block_params, kernel_size=P))

    assert out.shape == (Bsz, Bch, T)
    max_err = jnp.max(jnp.abs(out - ref))
    # Tolerance accounts for bf16 MXU operands (f32 accumulation) across 3 stacked blocks.
    assert jnp.allclose(out, ref, atol=3e-2, rtol=3e-2), f"max abs err {max_err}"
    print("KERNEL_OK")
</pallas_src>

<mosaic_0001>
module attributes {stable_mosaic.version = 11 : i64} {
  func.func @_tcn_fused_kernel(%arg0: i32, %arg1: memref<3x2xf32, #tpu.memory_space<smem>>, %arg2: memref<1x16x128xf32, #tpu.memory_space<vmem>>, %arg3: memref<3x32x16xbf16, #tpu.memory_space<vmem>>, %arg4: memref<3x16x32xbf16, #tpu.memory_space<vmem>>, %arg5: memref<3x32x5xf32, #tpu.memory_space<vmem>>, %arg6: memref<3x16x1xf32, #tpu.memory_space<vmem>>, %arg7: memref<1x16x128xf32, #tpu.memory_space<vmem>>) attributes {dimension_semantics = [#tpu.dimension_semantics<parallel>], iteration_bounds = array<i64: 8>, scalar_prefetch = 0 : i64, scratch_operands = 0 : i64, tpu.core_type = #tpu.core_type<tc>, window_params = [{transform_indices = @transform_0, window_bounds = array<i64: 3, 2>}, {transform_indices = @transform_1, window_bounds = array<i64: 1, 16, 128>}, {pipeline_mode = #tpu.pipeline_mode<synchronous>, transform_indices = @transform_2, window_bounds = array<i64: 3, 32, 16>}, {pipeline_mode = #tpu.pipeline_mode<synchronous>, transform_indices = @transform_3, window_bounds = array<i64: 3, 16, 32>}, {pipeline_mode = #tpu.pipeline_mode<synchronous>, transform_indices = @transform_4, window_bounds = array<i64: 3, 32, 5>}, {pipeline_mode = #tpu.pipeline_mode<synchronous>, transform_indices = @transform_5, window_bounds = array<i64: 3, 16, 1>}, {transform_indices = @transform_6, window_bounds = array<i64: 1, 16, 128>}]} {
    %c0 = arith.constant 0 : index
    %c0_0 = arith.constant 0 : index
    %c0_1 = arith.constant 0 : index
    %0 = vector.load %arg2[%c0, %c0_0, %c0_1] : memref<1x16x128xf32, #tpu.memory_space<vmem>>, vector<1x16x128xf32>
    %1 = vector.shape_cast %0 : vector<1x16x128xf32> to vector<16x128xf32>
    %2 = tpu.iota {dimensions = array<i32: 1>} : vector<32x128xi32>
    %c0_2 = arith.constant 0 : index
    %c0_3 = arith.constant 0 : index
    %3 = memref.load %arg1[%c0_2, %c0_3] : memref<3x2xf32, #tpu.memory_space<smem>>
    %c0_4 = arith.constant 0 : index
    %c1 = arith.constant 1 : index
    %4 = memref.load %arg1[%c0_4, %c1] : memref<3x2xf32, #tpu.memory_space<smem>>
    %c0_5 = arith.constant 0 : index
    %c0_6 = arith.constant 0 : index
    %c0_7 = arith.constant 0 : index
    %5 = vector.load %arg3[%c0_5, %c0_6, %c0_7] : memref<3x32x16xbf16, #tpu.memory_space<vmem>>, vector<1x32x16xbf16>
    %6 = vector.shape_cast %5 : vector<1x32x16xbf16> to vector<32x16xbf16>
    %7 = arith.truncf %1 : vector<16x128xf32> to vector<16x128xbf16>
    %cst = arith.constant dense<0.000000e+00> : vector<32x128xf32>
    %8 = tpu.matmul %6, %7, %cst {dimension_numbers = #tpu.dot_dimension_numbers<[1], [0], [0], [1], [0, 0, 1, 1], [], []>} : vector<32x16xbf16>, vector<16x128xbf16>, vector<32x128xf32> -> vector<32x128xf32>
    %cst_8 = arith.constant 0.000000e+00 : f32
    %9 = vector.broadcast %cst_8 : f32 to vector<32x128xf32>
    %10 = arith.cmpf oge, %8, %9 : vector<32x128xf32>
    %11 = vector.broadcast %3 : f32 to vector<32x128xf32>
    %12 = arith.mulf %11, %8 : vector<32x128xf32>
    %13 = arith.select %10, %8, %12 : vector<32x128xi1>, vector<32x128xf32>
    %14 = arith.mulf %13, %13 : vector<32x128xf32>
    %15 = tpu.concatenate %13, %14 in 0 : vector<32x128xf32>, vector<32x128xf32> -> vector<64x128xf32>
    %cst_9 = arith.constant dense<0.000000e+00> : vector<64xf32>
    %16 = vector.multi_reduction <add>, %15, %cst_9 [1] : vector<64x128xf32> to vector<64xf32>
    %17 = vector.shape_cast %16 : vector<64xf32> to vector<64x1xf32>
    %18 = vector.extract_strided_slice %17 {offsets = [0, 0], sizes = [32, 1], strides = [1, 1]} : vector<64x1xf32> to vector<32x1xf32>
    %19 = vector.shape_cast %18 : vector<32x1xf32> to vector<1x32x1xf32>
    %cst_10 = arith.constant dense<0.000000e+00> : vector<1xf32>
    %20 = vector.multi_reduction <add>, %19, %cst_10 [1, 2] : vector<1x32x1xf32> to vector<1xf32>
    %21 = vector.shape_cast %20 : vector<1xf32> to vector<1x1x1xf32>
    %22 = vector.extract %21[0, 0, 0] : f32 from vector<1x1x1xf32>
    %cst_11 = arith.constant 4.096000e+03 : f32
    %23 = arith.divf %22, %cst_11 : f32
    %24 = vector.extract_strided_slice %17 {offsets = [32, 0], sizes = [32, 1], strides = [1, 1]} : vector<64x1xf32> to vector<32x1xf32>
    %25 = vector.shape_cast %24 : vector<32x1xf32> to vector<1x32x1xf32>
    %cst_12 = arith.constant dense<0.000000e+00> : vector<1xf32>
    %26 = vector.multi_reduction <add>, %25, %cst_12 [1, 2] : vector<1x32x1xf32> to vector<1xf32>
    %27 = vector.shape_cast %26 : vector<1xf32> to vector<1x1x1xf32>
    %28 = vector.extract %27[0, 0, 0] : f32 from vector<1x1x1xf32>
    %cst_13 = arith.constant 4.096000e+03 : f32
    %29 = arith.divf %28, %cst_13 : f32
    %30 = arith.mulf %23, %23 : f32
    %31 = arith.subf %29, %30 : f32
    %cst_14 = arith.constant 0.000000e+00 : f32
    %32 = arith.maximumf %31, %cst_14 : f32
    %cst_15 = arith.constant 9.99999993E-9 : f32
    %33 = arith.addf %32, %cst_15 : f32
    %34 = math.rsqrt %33 : f32
    %c0_16 = arith.constant 0 : index
    %c0_17 = arith.constant 0 : index
    %c0_18 = arith.constant 0 : index
    %35 = vector.load %arg5[%c0_16, %c0_17, %c0_18] : memref<3x32x5xf32, #tpu.memory_space<vmem>>, vector<1x32x5xf32>
    %36 = vector.shape_cast %35 : vector<1x32x5xf32> to vector<32x5xf32>
    %37 = vector.extract_strided_slice %36 {offsets = [0, 0], sizes = [32, 1], strides = [1, 1]} : vector<32x5xf32> to vector<32x1xf32>
    %38 = vector.extract_strided_slice %36 {offsets = [0, 1], sizes = [32, 1], strides = [1, 1]} : vector<32x5xf32> to vector<32x1xf32>
    %39 = vector.extract_strided_slice %36 {offsets = [0, 2], sizes = [32, 3], strides = [1, 1]} : vector<32x5xf32> to vector<32x3xf32>
    %40 = vector.broadcast %34 : f32 to vector<32x1xf32>
    %41 = arith.mulf %37, %40 : vector<32x1xf32>
    %42 = vector.broadcast %23 : f32 to vector<32x1xf32>
    %43 = arith.mulf %41, %42 : vector<32x1xf32>
    %44 = arith.subf %38, %43 : vector<32x1xf32>
    %45 = vector.broadcast %41 : vector<32x1xf32> to vector<32x128xf32>
    %46 = arith.mulf %45, %13 : vector<32x128xf32>
    %47 = vector.broadcast %44 : vector<32x1xf32> to vector<32x128xf32>
    %48 = arith.addf %46, %47 : vector<32x128xf32>
    %cst_19 = arith.constant 0.000000e+00 : f32
    %49 = vector.broadcast %cst_19 : f32 to vector<32x128xf32>
    %c1_i32 = arith.constant 1 : i32
    %50 = tpu.dynamic_rotate %48 by %c1_i32 dim 1 : vector<32x128xf32>, i32 -> vector<32x128xf32>
    %c1_i32_20 = arith.constant 1 : i32
    %51 = vector.broadcast %c1_i32_20 : i32 to vector<32x128xi32>
    %52 = arith.cmpi sge, %2, %51 : vector<32x128xi32>
    %cst_21 = arith.constant 0.000000e+00 : f32
    %53 = vector.broadcast %cst_21 : f32 to vector<32x128xf32>
    %54 = arith.select %52, %50, %53 : vector<32x128xi1>, vector<32x128xf32>
    %55 = vector.extract_strided_slice %39 {offsets = [0, 0], sizes = [32, 1], strides = [1, 1]} : vector<32x3xf32> to vector<32x1xf32>
    %56 = vector.broadcast %55 : vector<32x1xf32> to vector<32x128xf32>
    %57 = arith.mulf %56, %54 : vector<32x128xf32>
    %58 = arith.addf %49, %57 : vector<32x128xf32>
    %59 = vector.extract_strided_slice %39 {offsets = [0, 1], sizes = [32, 1], strides = [1, 1]} : vector<32x3xf32> to vector<32x1xf32>
    %60 = vector.broadcast %59 : vector<32x1xf32> to vector<32x128xf32>
    %61 = arith.mulf %60, %48 : vector<32x128xf32>
    %62 = arith.addf %58, %61 : vector<32x128xf32>
    %c127_i32 = arith.constant 127 : i32
    %63 = tpu.dynamic_rotate %48 by %c127_i32 dim 1 : vector<32x128xf32>, i32 -> vector<32x128xf32>
    %c127_i32_22 = arith.constant 127 : i32
    %64 = vector.broadcast %c127_i32_22 : i32 to vector<32x128xi32>
    %65 = arith.cmpi slt, %2, %64 : vector<32x128xi32>
    %cst_23 = arith.constant 0.000000e+00 : f32
    %66 = vector.broadcast %cst_23 : f32 to vector<32x128xf32>
    %67 = arith.select %65, %63, %66 : vector<32x128xi1>, vector<32x128xf32>
    %68 = vector.extract_strided_slice %39 {offsets = [0, 2], sizes = [32, 1], strides = [1, 1]} : vector<32x3xf32> to vector<32x1xf32>
    %69 = vector.broadcast %68 : vector<32x1xf32> to vector<32x128xf32>
    %70 = arith.mulf %69, %67 : vector<32x128xf32>
    %71 = arith.addf %62, %70 : vector<32x128xf32>
    %cst_24 = arith.constant 0.000000e+00 : f32
    %72 = vector.broadcast %cst_24 : f32 to vector<32x128xf32>
    %73 = arith.cmpf oge, %71, %72 : vector<32x128xf32>
    %74 = vector.broadcast %4 : f32 to vector<32x128xf32>
    %75 = arith.mulf %74, %71 : vector<32x128xf32>
    %76 = arith.select %73, %71, %75 : vector<32x128xi1>, vector<32x128xf32>
    %77 = arith.mulf %76, %76 : vector<32x128xf32>
    %78 = tpu.concatenate %76, %77 in 0 : vector<32x128xf32>, vector<32x128xf32> -> vector<64x128xf32>
    %cst_25 = arith.constant dense<0.000000e+00> : vector<64xf32>
    %79 = vector.multi_reduction <add>, %78, %cst_25 [1] : vector<64x128xf32> to vector<64xf32>
    %80 = vector.shape_cast %79 : vector<64xf32> to vector<64x1xf32>
    %81 = vector.extract_strided_slice %80 {offsets = [0, 0], sizes = [32, 1], strides = [1, 1]} : vector<64x1xf32> to vector<32x1xf32>
    %82 = vector.shape_cast %81 : vector<32x1xf32> to vector<1x32x1xf32>
    %cst_26 = arith.constant dense<0.000000e+00> : vector<1xf32>
    %83 = vector.multi_reduction <add>, %82, %cst_26 [1, 2] : vector<1x32x1xf32> to vector<1xf32>
    %84 = vector.shape_cast %83 : vector<1xf32> to vector<1x1x1xf32>
    %85 = vector.extract %84[0, 0, 0] : f32 from vector<1x1x1xf32>
    %cst_27 = arith.constant 4.096000e+03 : f32
    %86 = arith.divf %85, %cst_27 : f32
    %87 = vector.extract_strided_slice %80 {offsets = [32, 0], sizes = [32, 1], strides = [1, 1]} : vector<64x1xf32> to vector<32x1xf32>
    %88 = vector.shape_cast %87 : vector<32x1xf32> to vector<1x32x1xf32>
    %cst_28 = arith.constant dense<0.000000e+00> : vector<1xf32>
    %89 = vector.multi_reduction <add>, %88, %cst_28 [1, 2] : vector<1x32x1xf32> to vector<1xf32>
    %90 = vector.shape_cast %89 : vector<1xf32> to vector<1x1x1xf32>
    %91 = vector.extract %90[0, 0, 0] : f32 from vector<1x1x1xf32>
    %cst_29 = arith.constant 4.096000e+03 : f32
    %92 = arith.divf %91, %cst_29 : f32
    %93 = arith.mulf %86, %86 : f32
    %94 = arith.subf %92, %93 : f32
    %cst_30 = arith.constant 0.000000e+00 : f32
    %95 = arith.maximumf %94, %cst_30 : f32
    %cst_31 = arith.constant 9.99999993E-9 : f32
    %96 = arith.addf %95, %cst_31 : f32
    %97 = math.rsqrt %96 : f32
    %98 = vector.broadcast %86 : f32 to vector<32x128xf32>
    %99 = arith.subf %76, %98 : vector<32x128xf32>
    %100 = vector.broadcast %97 : f32 to vector<32x128xf32>
    %101 = arith.mulf %99, %100 : vector<32x128xf32>
    %102 = arith.truncf %101 : vector<32x128xf32> to vector<32x128xbf16>
    %c0_32 = arith.constant 0 : index
    %c0_33 = arith.constant 0 : index
    %c0_34 = arith.constant 0 : index
    %103 = vector.load %arg4[%c0_32, %c0_33, %c0_34] : memref<3x16x32xbf16, #tpu.memory_space<vmem>>, vector<1x16x32xbf16>
    %104 = vector.shape_cast %103 : vector<1x16x32xbf16> to vector<16x32xbf16>
    %cst_35 = arith.constant dense<0.000000e+00> : vector<16x128xf32>
    %105 = tpu.matmul %104, %102, %cst_35 {dimension_numbers = #tpu.dot_dimension_numbers<[1], [0], [0], [1], [0, 0, 1, 1], [], []>} : vector<16x32xbf16>, vector<32x128xbf16>, vector<16x128xf32> -> vector<16x128xf32>
    %c0_36 = arith.constant 0 : index
    %c0_37 = arith.constant 0 : index
    %c0_38 = arith.constant 0 : index
    %106 = vector.load %arg6[%c0_36, %c0_37, %c0_38] : memref<3x16x1xf32, #tpu.memory_space<vmem>>, vector<1x16x1xf32>
    %107 = vector.shape_cast %106 : vector<1x16x1xf32> to vector<16x1xf32>
    %108 = vector.broadcast %107 : vector<16x1xf32> to vector<16x128xf32>
    %109 = arith.addf %105, %108 : vector<16x128xf32>
    %110 = arith.addf %109, %1 : vector<16x128xf32>
    %c1_39 = arith.constant 1 : index
    %c0_40 = arith.constant 0 : index
    %111 = memref.load %arg1[%c1_39, %c0_40] : memref<3x2xf32, #tpu.memory_space<smem>>
    %c1_41 = arith.constant 1 : index
    %c1_42 = arith.constant 1 : index
    %112 = memref.load %arg1[%c1_41, %c1_42] : memref<3x2xf32, #tpu.memory_space<smem>>
    %c1_43 = arith.constant 1 : index
    %c0_44 = arith.constant 0 : index
    %c0_45 = arith.constant 0 : index
    %113 = vector.load %arg3[%c1_43, %c0_44, %c0_45] : memref<3x32x16xbf16, #tpu.memory_space<vmem>>, vector<1x32x16xbf16>
    %114 = vector.shape_cast %113 : vector<1x32x16xbf16> to vector<32x16xbf16>
    %115 = arith.truncf %110 : vector<16x128xf32> to vector<16x128xbf16>
    %cst_46 = arith.constant dense<0.000000e+00> : vector<32x128xf32>
    %116 = tpu.matmul %114, %115, %cst_46 {dimension_numbers = #tpu.dot_dimension_numbers<[1], [0], [0], [1], [0, 0, 1, 1], [], []>} : vector<32x16xbf16>, vector<16x128xbf16>, vector<32x128xf32> -> vector<32x128xf32>
    %cst_47 = arith.constant 0.000000e+00 : f32
    %117 = vector.broadcast %cst_47 : f32 to vector<32x128xf32>
    %118 = arith.cmpf oge, %116, %117 : vector<32x128xf32>
    %119 = vector.broadcast %111 : f32 to vector<32x128xf32>
    %120 = arith.mulf %119, %116 : vector<32x128xf32>
    %121 = arith.select %118, %116, %120 : vector<32x128xi1>, vector<32x128xf32>
    %122 = arith.mulf %121, %121 : vector<32x128xf32>
    %123 = tpu.concatenate %121, %122 in 0 : vector<32x128xf32>, vector<32x128xf32> -> vector<64x128xf32>
    %cst_48 = arith.constant dense<0.000000e+00> : vector<64xf32>
    %124 = vector.multi_reduction <add>, %123, %cst_48 [1] : vector<64x128xf32> to vector<64xf32>
    %125 = vector.shape_cast %124 : vector<64xf32> to vector<64x1xf32>
    %126 = vector.extract_strided_slice %125 {offsets = [0, 0], sizes = [32, 1], strides = [1, 1]} : vector<64x1xf32> to vector<32x1xf32>
    %127 = vector.shape_cast %126 : vector<32x1xf32> to vector<1x32x1xf32>
    %cst_49 = arith.constant dense<0.000000e+00> : vector<1xf32>
    %128 = vector.multi_reduction <add>, %127, %cst_49 [1, 2] : vector<1x32x1xf32> to vector<1xf32>
    %129 = vector.shape_cast %128 : vector<1xf32> to vector<1x1x1xf32>
    %130 = vector.extract %129[0, 0, 0] : f32 from vector<1x1x1xf32>
    %cst_50 = arith.constant 4.096000e+03 : f32
    %131 = arith.divf %130, %cst_50 : f32
    %132 = vector.extract_strided_slice %125 {offsets = [32, 0], sizes = [32, 1], strides = [1, 1]} : vector<64x1xf32> to vector<32x1xf32>
    %133 = vector.shape_cast %132 : vector<32x1xf32> to vector<1x32x1xf32>
    %cst_51 = arith.constant dense<0.000000e+00> : vector<1xf32>
    %134 = vector.multi_reduction <add>, %133, %cst_51 [1, 2] : vector<1x32x1xf32> to vector<1xf32>
    %135 = vector.shape_cast %134 : vector<1xf32> to vector<1x1x1xf32>
    %136 = vector.extract %135[0, 0, 0] : f32 from vector<1x1x1xf32>
    %cst_52 = arith.constant 4.096000e+03 : f32
    %137 = arith.divf %136, %cst_52 : f32
    %138 = arith.mulf %131, %131 : f32
    %139 = arith.subf %137, %138 : f32
    %cst_53 = arith.constant 0.000000e+00 : f32
    %140 = arith.maximumf %139, %cst_53 : f32
    %cst_54 = arith.constant 9.99999993E-9 : f32
    %141 = arith.addf %140, %cst_54 : f32
    %142 = math.rsqrt %141 : f32
    %c1_55 = arith.constant 1 : index
    %c0_56 = arith.constant 0 : index
    %c0_57 = arith.constant 0 : index
    %143 = vector.load %arg5[%c1_55, %c0_56, %c0_57] : memref<3x32x5xf32, #tpu.memory_space<vmem>>, vector<1x32x5xf32>
    %144 = vector.shape_cast %143 : vector<1x32x5xf32> to vector<32x5xf32>
    %145 = vector.extract_strided_slice %144 {offsets = [0, 0], sizes = [32, 1], strides = [1, 1]} : vector<32x5xf32> to vector<32x1xf32>
    %146 = vector.extract_strided_slice %144 {offsets = [0, 1], sizes = [32, 1], strides = [1, 1]} : vector<32x5xf32> to vector<32x1xf32>
    %147 = vector.extract_strided_slice %144 {offsets = [0, 2], sizes = [32, 3], strides = [1, 1]} : vector<32x5xf32> to vector<32x3xf32>
    %148 = vector.broadcast %142 : f32 to vector<32x1xf32>
    %149 = arith.mulf %145, %148 : vector<32x1xf32>
    %150 = vector.broadcast %131 : f32 to vector<32x1xf32>
    %151 = arith.mulf %149, %150 : vector<32x1xf32>
    %152 = arith.subf %146, %151 : vector<32x1xf32>
    %153 = vector.broadcast %149 : vector<32x1xf32> to vector<32x128xf32>
    %154 = arith.mulf %153, %121 : vector<32x128xf32>
    %155 = vector.broadcast %152 : vector<32x1xf32> to vector<32x128xf32>
    %156 = arith.addf %154, %155 : vector<32x128xf32>
    %cst_58 = arith.constant 0.000000e+00 : f32
    %157 = vector.broadcast %cst_58 : f32 to vector<32x128xf32>
    %c2_i32 = arith.constant 2 : i32
    %158 = tpu.dynamic_rotate %156 by %c2_i32 dim 1 : vector<32x128xf32>, i32 -> vector<32x128xf32>
    %c2_i32_59 = arith.constant 2 : i32
    %159 = vector.broadcast %c2_i32_59 : i32 to vector<32x128xi32>
    %160 = arith.cmpi sge, %2, %159 : vector<32x128xi32>
    %cst_60 = arith.constant 0.000000e+00 : f32
    %161 = vector.broadcast %cst_60 : f32 to vector<32x128xf32>
    %162 = arith.select %160, %158, %161 : vector<32x128xi1>, vector<32x128xf32>
    %163 = vector.extract_strided_slice %147 {offsets = [0, 0], sizes = [32, 1], strides = [1, 1]} : vector<32x3xf32> to vector<32x1xf32>
    %164 = vector.broadcast %163 : vector<32x1xf32> to vector<32x128xf32>
    %165 = arith.mulf %164, %162 : vector<32x128xf32>
    %166 = arith.addf %157, %165 : vector<32x128xf32>
    %167 = vector.extract_strided_slice %147 {offsets = [0, 1], sizes = [32, 1], strides = [1, 1]} : vector<32x3xf32> to vector<32x1xf32>
    %168 = vector.broadcast %167 : vector<32x1xf32> to vector<32x128xf32>
    %169 = arith.mulf %168, %156 : vector<32x128xf32>
    %170 = arith.addf %166, %169 : vector<32x128xf32>
    %c126_i32 = arith.constant 126 : i32
    %171 = tpu.dynamic_rotate %156 by %c126_i32 dim 1 : vector<32x128xf32>, i32 -> vector<32x128xf32>
    %c126_i32_61 = arith.constant 126 : i32
    %172 = vector.broadcast %c126_i32_61 : i32 to vector<32x128xi32>
    %173 = arith.cmpi slt, %2, %172 : vector<32x128xi32>
    %cst_62 = arith.constant 0.000000e+00 : f32
    %174 = vector.broadcast %cst_62 : f32 to vector<32x128xf32>
    %175 = arith.select %173, %171, %174 : vector<32x128xi1>, vector<32x128xf32>
    %176 = vector.extract_strided_slice %147 {offsets = [0, 2], sizes = [32, 1], strides = [1, 1]} : vector<32x3xf32> to vector<32x1xf32>
    %177 = vector.broadcast %176 : vector<32x1xf32> to vector<32x128xf32>
    %178 = arith.mulf %177, %175 : vector<32x128xf32>
    %179 = arith.addf %170, %178 : vector<32x128xf32>
    %cst_63 = arith.constant 0.000000e+00 : f32
    %180 = vector.broadcast %cst_63 : f32 to vector<32x128xf32>
    %181 = arith.cmpf oge, %179, %180 : vector<32x128xf32>
    %182 = vector.broadcast %112 : f32 to vector<32x128xf32>
    %183 = arith.mulf %182, %179 : vector<32x128xf32>
    %184 = arith.select %181, %179, %183 : vector<32x128xi1>, vector<32x128xf32>
    %185 = arith.mulf %184, %184 : vector<32x128xf32>
    %186 = tpu.concatenate %184, %185 in 0 : vector<32x128xf32>, vector<32x128xf32> -> vector<64x128xf32>
    %cst_64 = arith.constant dense<0.000000e+00> : vector<64xf32>
    %187 = vector.multi_reduction <add>, %186, %cst_64 [1] : vector<64x128xf32> to vector<64xf32>
    %188 = vector.shape_cast %187 : vector<64xf32> to vector<64x1xf32>
    %189 = vector.extract_strided_slice %188 {offsets = [0, 0], sizes = [32, 1], strides = [1, 1]} : vector<64x1xf32> to vector<32x1xf32>
    %190 = vector.shape_cast %189 : vector<32x1xf32> to vector<1x32x1xf32>
    %cst_65 = arith.constant dense<0.000000e+00> : vector<1xf32>
    %191 = vector.multi_reduction <add>, %190, %cst_65 [1, 2] : vector<1x32x1xf32> to vector<1xf32>
    %192 = vector.shape_cast %191 : vector<1xf32> to vector<1x1x1xf32>
    %193 = vector.extract %192[0, 0, 0] : f32 from vector<1x1x1xf32>
    %cst_66 = arith.constant 4.096000e+03 : f32
    %194 = arith.divf %193, %cst_66 : f32
    %195 = vector.extract_strided_slice %188 {offsets = [32, 0], sizes = [32, 1], strides = [1, 1]} : vector<64x1xf32> to vector<32x1xf32>
    %196 = vector.shape_cast %195 : vector<32x1xf32> to vector<1x32x1xf32>
    %cst_67 = arith.constant dense<0.000000e+00> : vector<1xf32>
    %197 = vector.multi_reduction <add>, %196, %cst_67 [1, 2] : vector<1x32x1xf32> to vector<1xf32>
    %198 = vector.shape_cast %197 : vector<1xf32> to vector<1x1x1xf32>
    %199 = vector.extract %198[0, 0, 0] : f32 from vector<1x1x1xf32>
    %cst_68 = arith.constant 4.096000e+03 : f32
    %200 = arith.divf %199, %cst_68 : f32
    %201 = arith.mulf %194, %194 : f32
    %202 = arith.subf %200, %201 : f32
    %cst_69 = arith.constant 0.000000e+00 : f32
    %203 = arith.maximumf %202, %cst_69 : f32
    %cst_70 = arith.constant 9.99999993E-9 : f32
    %204 = arith.addf %203, %cst_70 : f32
    %205 = math.rsqrt %204 : f32
    %206 = vector.broadcast %194 : f32 to vector<32x128xf32>
    %207 = arith.subf %184, %206 : vector<32x128xf32>
    %208 = vector.broadcast %205 : f32 to vector<32x128xf32>
    %209 = arith.mulf %207, %208 : vector<32x128xf32>
    %210 = arith.truncf %209 : vector<32x128xf32> to vector<32x128xbf16>
    %c1_71 = arith.constant 1 : index
    %c0_72 = arith.constant 0 : index
    %c0_73 = arith.constant 0 : index
    %211 = vector.load %arg4[%c1_71, %c0_72, %c0_73] : memref<3x16x32xbf16, #tpu.memory_space<vmem>>, vector<1x16x32xbf16>
    %212 = vector.shape_cast %211 : vector<1x16x32xbf16> to vector<16x32xbf16>
    %cst_74 = arith.constant dense<0.000000e+00> : vector<16x128xf32>
    %213 = tpu.matmul %212, %210, %cst_74 {dimension_numbers = #tpu.dot_dimension_numbers<[1], [0], [0], [1], [0, 0, 1, 1], [], []>} : vector<16x32xbf16>, vector<32x128xbf16>, vector<16x128xf32> -> vector<16x128xf32>
    %c1_75 = arith.constant 1 : index
    %c0_76 = arith.constant 0 : index
    %c0_77 = arith.constant 0 : index
    %214 = vector.load %arg6[%c1_75, %c0_76, %c0_77] : memref<3x16x1xf32, #tpu.memory_space<vmem>>, vector<1x16x1xf32>
    %215 = vector.shape_cast %214 : vector<1x16x1xf32> to vector<16x1xf32>
    %216 = vector.broadcast %215 : vector<16x1xf32> to vector<16x128xf32>
    %217 = arith.addf %213, %216 : vector<16x128xf32>
    %218 = arith.addf %217, %110 : vector<16x128xf32>
    %c2 = arith.constant 2 : index
    %c0_78 = arith.constant 0 : index
    %219 = memref.load %arg1[%c2, %c0_78] : memref<3x2xf32, #tpu.memory_space<smem>>
    %c2_79 = arith.constant 2 : index
    %c1_80 = arith.constant 1 : index
    %220 = memref.load %arg1[%c2_79, %c1_80] : memref<3x2xf32, #tpu.memory_space<smem>>
    %c2_81 = arith.constant 2 : index
    %c0_82 = arith.constant 0 : index
    %c0_83 = arith.constant 0 : index
    %221 = vector.load %arg3[%c2_81, %c0_82, %c0_83] : memref<3x32x16xbf16, #tpu.memory_space<vmem>>, vector<1x32x16xbf16>
    %222 = vector.shape_cast %221 : vector<1x32x16xbf16> to vector<32x16xbf16>
    %223 = arith.truncf %218 : vector<16x128xf32> to vector<16x128xbf16>
    %cst_84 = arith.constant dense<0.000000e+00> : vector<32x128xf32>
    %224 = tpu.matmul %222, %223, %cst_84 {dimension_numbers = #tpu.dot_dimension_numbers<[1], [0], [0], [1], [0, 0, 1, 1], [], []>} : vector<32x16xbf16>, vector<16x128xbf16>, vector<32x128xf32> -> vector<32x128xf32>
    %cst_85 = arith.constant 0.000000e+00 : f32
    %225 = vector.broadcast %cst_85 : f32 to vector<32x128xf32>
    %226 = arith.cmpf oge, %224, %225 : vector<32x128xf32>
    %227 = vector.broadcast %219 : f32 to vector<32x128xf32>
    %228 = arith.mulf %227, %224 : vector<32x128xf32>
    %229 = arith.select %226, %224, %228 : vector<32x128xi1>, vector<32x128xf32>
    %230 = arith.mulf %229, %229 : vector<32x128xf32>
    %231 = tpu.concatenate %229, %230 in 0 : vector<32x128xf32>, vector<32x128xf32> -> vector<64x128xf32>
    %cst_86 = arith.constant dense<0.000000e+00> : vector<64xf32>
    %232 = vector.multi_reduction <add>, %231, %cst_86 [1] : vector<64x128xf32> to vector<64xf32>
    %233 = vector.shape_cast %232 : vector<64xf32> to vector<64x1xf32>
    %234 = vector.extract_strided_slice %233 {offsets = [0, 0], sizes = [32, 1], strides = [1, 1]} : vector<64x1xf32> to vector<32x1xf32>
    %235 = vector.shape_cast %234 : vector<32x1xf32> to vector<1x32x1xf32>
    %cst_87 = arith.constant dense<0.000000e+00> : vector<1xf32>
    %236 = vector.multi_reduction <add>, %235, %cst_87 [1, 2] : vector<1x32x1xf32> to vector<1xf32>
    %237 = vector.shape_cast %236 : vector<1xf32> to vector<1x1x1xf32>
    %238 = vector.extract %237[0, 0, 0] : f32 from vector<1x1x1xf32>
    %cst_88 = arith.constant 4.096000e+03 : f32
    %239 = arith.divf %238, %cst_88 : f32
    %240 = vector.extract_strided_slice %233 {offsets = [32, 0], sizes = [32, 1], strides = [1, 1]} : vector<64x1xf32> to vector<32x1xf32>
    %241 = vector.shape_cast %240 : vector<32x1xf32> to vector<1x32x1xf32>
    %cst_89 = arith.constant dense<0.000000e+00> : vector<1xf32>
    %242 = vector.multi_reduction <add>, %241, %cst_89 [1, 2] : vector<1x32x1xf32> to vector<1xf32>
    %243 = vector.shape_cast %242 : vector<1xf32> to vector<1x1x1xf32>
    %244 = vector.extract %243[0, 0, 0] : f32 from vector<1x1x1xf32>
    %cst_90 = arith.constant 4.096000e+03 : f32
    %245 = arith.divf %244, %cst_90 : f32
    %246 = arith.mulf %239, %239 : f32
    %247 = arith.subf %245, %246 : f32
    %cst_91 = arith.constant 0.000000e+00 : f32
    %248 = arith.maximumf %247, %cst_91 : f32
    %cst_92 = arith.constant 9.99999993E-9 : f32
    %249 = arith.addf %248, %cst_92 : f32
    %250 = math.rsqrt %249 : f32
    %c2_93 = arith.constant 2 : index
    %c0_94 = arith.constant 0 : index
    %c0_95 = arith.constant 0 : index
    %251 = vector.load %arg5[%c2_93, %c0_94, %c0_95] : memref<3x32x5xf32, #tpu.memory_space<vmem>>, vector<1x32x5xf32>
    %252 = vector.shape_cast %251 : vector<1x32x5xf32> to vector<32x5xf32>
    %253 = vector.extract_strided_slice %252 {offsets = [0, 0], sizes = [32, 1], strides = [1, 1]} : vector<32x5xf32> to vector<32x1xf32>
    %254 = vector.extract_strided_slice %252 {offsets = [0, 1], sizes = [32, 1], strides = [1, 1]} : vector<32x5xf32> to vector<32x1xf32>
    %255 = vector.extract_strided_slice %252 {offsets = [0, 2], sizes = [32, 3], strides = [1, 1]} : vector<32x5xf32> to vector<32x3xf32>
    %256 = vector.broadcast %250 : f32 to vector<32x1xf32>
    %257 = arith.mulf %253, %256 : vector<32x1xf32>
    %258 = vector.broadcast %239 : f32 to vector<32x1xf32>
    %259 = arith.mulf %257, %258 : vector<32x1xf32>
    %260 = arith.subf %254, %259 : vector<32x1xf32>
    %261 = vector.broadcast %257 : vector<32x1xf32> to vector<32x128xf32>
    %262 = arith.mulf %261, %229 : vector<32x128xf32>
    %263 = vector.broadcast %260 : vector<32x1xf32> to vector<32x128xf32>
    %264 = arith.addf %262, %263 : vector<32x128xf32>
    %cst_96 = arith.constant 0.000000e+00 : f32
    %265 = vector.broadcast %cst_96 : f32 to vector<32x128xf32>
    %c4_i32 = arith.constant 4 : i32
    %266 = tpu.dynamic_rotate %264 by %c4_i32 dim 1 : vector<32x128xf32>, i32 -> vector<32x128xf32>
    %c4_i32_97 = arith.constant 4 : i32
    %267 = vector.broadcast %c4_i32_97 : i32 to vector<32x128xi32>
    %268 = arith.cmpi sge, %2, %267 : vector<32x128xi32>
    %cst_98 = arith.constant 0.000000e+00 : f32
    %269 = vector.broadcast %cst_98 : f32 to vector<32x128xf32>
    %270 = arith.select %268, %266, %269 : vector<32x128xi1>, vector<32x128xf32>
    %271 = vector.extract_strided_slice %255 {offsets = [0, 0], sizes = [32, 1], strides = [1, 1]} : vector<32x3xf32> to vector<32x1xf32>
    %272 = vector.broadcast %271 : vector<32x1xf32> to vector<32x128xf32>
    %273 = arith.mulf %272, %270 : vector<32x128xf32>
    %274 = arith.addf %265, %273 : vector<32x128xf32>
    %275 = vector.extract_strided_slice %255 {offsets = [0, 1], sizes = [32, 1], strides = [1, 1]} : vector<32x3xf32> to vector<32x1xf32>
    %276 = vector.broadcast %275 : vector<32x1xf32> to vector<32x128xf32>
    %277 = arith.mulf %276, %264 : vector<32x128xf32>
    %278 = arith.addf %274, %277 : vector<32x128xf32>
    %c124_i32 = arith.constant 124 : i32
    %279 = tpu.dynamic_rotate %264 by %c124_i32 dim 1 : vector<32x128xf32>, i32 -> vector<32x128xf32>
    %c124_i32_99 = arith.constant 124 : i32
    %280 = vector.broadcast %c124_i32_99 : i32 to vector<32x128xi32>
    %281 = arith.cmpi slt, %2, %280 : vector<32x128xi32>
    %cst_100 = arith.constant 0.000000e+00 : f32
    %282 = vector.broadcast %cst_100 : f32 to vector<32x128xf32>
    %283 = arith.select %281, %279, %282 : vector<32x128xi1>, vector<32x128xf32>
    %284 = vector.extract_strided_slice %255 {offsets = [0, 2], sizes = [32, 1], strides = [1, 1]} : vector<32x3xf32> to vector<32x1xf32>
    %285 = vector.broadcast %284 : vector<32x1xf32> to vector<32x128xf32>
    %286 = arith.mulf %285, %283 : vector<32x128xf32>
    %287 = arith.addf %278, %286 : vector<32x128xf32>
    %cst_101 = arith.constant 0.000000e+00 : f32
    %288 = vector.broadcast %cst_101 : f32 to vector<32x128xf32>
    %289 = arith.cmpf oge, %287, %288 : vector<32x128xf32>
    %290 = vector.broadcast %220 : f32 to vector<32x128xf32>
    %291 = arith.mulf %290, %287 : vector<32x128xf32>
    %292 = arith.select %289, %287, %291 : vector<32x128xi1>, vector<32x128xf32>
    %293 = arith.mulf %292, %292 : vector<32x128xf32>
    %294 = tpu.concatenate %292, %293 in 0 : vector<32x128xf32>, vector<32x128xf32> -> vector<64x128xf32>
    %cst_102 = arith.constant dense<0.000000e+00> : vector<64xf32>
    %295 = vector.multi_reduction <add>, %294, %cst_102 [1] : vector<64x128xf32> to vector<64xf32>
    %296 = vector.shape_cast %295 : vector<64xf32> to vector<64x1xf32>
    %297 = vector.extract_strided_slice %296 {offsets = [0, 0], sizes = [32, 1], strides = [1, 1]} : vector<64x1xf32> to vector<32x1xf32>
    %298 = vector.shape_cast %297 : vector<32x1xf32> to vector<1x32x1xf32>
    %cst_103 = arith.constant dense<0.000000e+00> : vector<1xf32>
    %299 = vector.multi_reduction <add>, %298, %cst_103 [1, 2] : vector<1x32x1xf32> to vector<1xf32>
    %300 = vector.shape_cast %299 : vector<1xf32> to vector<1x1x1xf32>
    %301 = vector.extract %300[0, 0, 0] : f32 from vector<1x1x1xf32>
    %cst_104 = arith.constant 4.096000e+03 : f32
    %302 = arith.divf %301, %cst_104 : f32
    %303 = vector.extract_strided_slice %296 {offsets = [32, 0], sizes = [32, 1], strides = [1, 1]} : vector<64x1xf32> to vector<32x1xf32>
    %304 = vector.shape_cast %303 : vector<32x1xf32> to vector<1x32x1xf32>
    %cst_105 = arith.constant dense<0.000000e+00> : vector<1xf32>
    %305 = vector.multi_reduction <add>, %304, %cst_105 [1, 2] : vector<1x32x1xf32> to vector<1xf32>
    %306 = vector.shape_cast %305 : vector<1xf32> to vector<1x1x1xf32>
    %307 = vector.extract %306[0, 0, 0] : f32 from vector<1x1x1xf32>
    %cst_106 = arith.constant 4.096000e+03 : f32
    %308 = arith.divf %307, %cst_106 : f32
    %309 = arith.mulf %302, %302 : f32
    %310 = arith.subf %308, %309 : f32
    %cst_107 = arith.constant 0.000000e+00 : f32
    %311 = arith.maximumf %310, %cst_107 : f32
    %cst_108 = arith.constant 9.99999993E-9 : f32
    %312 = arith.addf %311, %cst_108 : f32
    %313 = math.rsqrt %312 : f32
    %314 = vector.broadcast %302 : f32 to vector<32x128xf32>
    %315 = arith.subf %292, %314 : vector<32x128xf32>
    %316 = vector.broadcast %313 : f32 to vector<32x128xf32>
    %317 = arith.mulf %315, %316 : vector<32x128xf32>
    %318 = arith.truncf %317 : vector<32x128xf32> to vector<32x128xbf16>
    %c2_109 = arith.constant 2 : index
    %c0_110 = arith.constant 0 : index
    %c0_111 = arith.constant 0 : index
    %319 = vector.load %arg4[%c2_109, %c0_110, %c0_111] : memref<3x16x32xbf16, #tpu.memory_space<vmem>>, vector<1x16x32xbf16>
    %320 = vector.shape_cast %319 : vector<1x16x32xbf16> to vector<16x32xbf16>
    %cst_112 = arith.constant dense<0.000000e+00> : vector<16x128xf32>
    %321 = tpu.matmul %320, %318, %cst_112 {dimension_numbers = #tpu.dot_dimension_numbers<[1], [0], [0], [1], [0, 0, 1, 1], [], []>} : vector<16x32xbf16>, vector<32x128xbf16>, vector<16x128xf32> -> vector<16x128xf32>
    %c2_113 = arith.constant 2 : index
    %c0_114 = arith.constant 0 : index
    %c0_115 = arith.constant 0 : index
    %322 = vector.load %arg6[%c2_113, %c0_114, %c0_115] : memref<3x16x1xf32, #tpu.memory_space<vmem>>, vector<1x16x1xf32>
    %323 = vector.shape_cast %322 : vector<1x16x1xf32> to vector<16x1xf32>
    %324 = vector.broadcast %323 : vector<16x1xf32> to vector<16x128xf32>
    %325 = arith.addf %321, %324 : vector<16x128xf32>
    %326 = arith.addf %325, %218 : vector<16x128xf32>
    %c0_116 = arith.constant 0 : index
    %c0_117 = arith.constant 0 : index
    %c0_118 = arith.constant 0 : index
    %327 = vector.load %arg7[%c0_116, %c0_117, %c0_118] : memref<1x16x128xf32, #tpu.memory_space<vmem>>, vector<1x16x128xf32>
    %328 = vector.shape_cast %327 : vector<1x16x128xf32> to vector<16x128xf32>
    %329 = vector.shape_cast %326 : vector<16x128xf32> to vector<1x16x128xf32>
    tpu.vector_store %arg7[%c0_116, %c0_117, %c0_118], %329 {strides = array<i32>} : memref<1x16x128xf32, #tpu.memory_space<vmem>>, vector<1x16x128xf32>,
    return
  }
  func.func @transform_0(%arg0: i32) -> (i32, i32) {
    %c0_i32 = arith.constant 0 : i32
    %c0_i32_0 = arith.constant 0 : i32
    %c0_i32_1 = arith.constant 0 : i32
    return %c0_i32, %c0_i32_0 : i32, i32
  }
  func.func @transform_1(%arg0: i32) -> (i32, i32, i32) {
    %c0_i32 = arith.constant 0 : i32
    %c0_i32_0 = arith.constant 0 : i32
    %c0_i32_1 = arith.constant 0 : i32
    return %arg0, %c0_i32, %c0_i32_0 : i32, i32, i32
  }
  func.func @transform_2(%arg0: i32) -> (i32, i32, i32) {
    %c0_i32 = arith.constant 0 : i32
    %c0_i32_0 = arith.constant 0 : i32
    %c0_i32_1 = arith.constant 0 : i32
    %c0_i32_2 = arith.constant 0 : i32
    return %c0_i32, %c0_i32_0, %c0_i32_1 : i32, i32, i32
  }
  func.func @transform_3(%arg0: i32) -> (i32, i32, i32) {
    %c0_i32 = arith.constant 0 : i32
    %c0_i32_0 = arith.constant 0 : i32
    %c0_i32_1 = arith.constant 0 : i32
    %c0_i32_2 = arith.constant 0 : i32
    return %c0_i32, %c0_i32_0, %c0_i32_1 : i32, i32, i32
  }
  func.func @transform_4(%arg0: i32) -> (i32, i32, i32) {
    %c0_i32 = arith.constant 0 : i32
    %c0_i32_0 = arith.constant 0 : i32
    %c0_i32_1 = arith.constant 0 : i32
    %c0_i32_2 = arith.constant 0 : i32
    return %c0_i32, %c0_i32_0, %c0_i32_1 : i32, i32, i32
  }
  func.func @transform_5(%arg0: i32) -> (i32, i32, i32) {
    %c0_i32 = arith.constant 0 : i32
    %c0_i32_0 = arith.constant 0 : i32
    %c0_i32_1 = arith.constant 0 : i32
    %c0_i32_2 = arith.constant 0 : i32
    return %c0_i32, %c0_i32_0, %c0_i32_1 : i32, i32, i32
  }
  func.func @transform_6(%arg0: i32) -> (i32, i32, i32) {
    %c0_i32 = arith.constant 0 : i32
    %c0_i32_0 = arith.constant 0 : i32
    %c0_i32_1 = arith.constant 0 : i32
    return %arg0, %c0_i32, %c0_i32_0 : i32, i32, i32
  }
}

</mosaic_0001>

<bundles_post_ra>
// kernel: tpu_custom_call.1
= control target key start
LH: loop header
LB: loop body
LE: loop exit
PB: predicated region body
PF: predicated region fallthrough
CT: control target
= control target key end

     0   :  { %s2820_s0 = inlined_call_operand.vmem [shape: f32[3,2], index: 0, kind: input, shape index: {}]   ;;  %s2821_s1 = inlined_call_operand.vmem [shape: f32[8,16,128], index: 1, kind: input, shape index: {}]   ;;  %s2822_s2 = inlined_call_operand.vmem [shape: bf16[3,32,16], index: 2, kind: input, shape index: {}]   ;;  %s2823_s3 = inlined_call_operand.vmem [shape: bf16[3,16,32], index: 3, kind: input, shape index: {}]   ;;  %s2824_s4 = inlined_call_operand.vmem [shape: f32[3,32,5], index: 4, kind: input, shape index: {}]   ;;  %s2825_s5 = inlined_call_operand.vmem [shape: f32[3,16,1], index: 5, kind: input, shape index: {}]   ;;  %s2826_s6 = inlined_call_operand.hbm [shape: f32[8,16,128], index: 6, kind: output, shape index: {}]  }
   0x1   :  { %2829 = sst [smem:[#allocation8_spill]] %s2820_s0 }
   0x2   :  { %11 = vsyncpa [#allocation4], 0 }
   0x3   :  { %12 = vsyncpa [#allocation3], 0 }
   0x4   :  { %14 = vsyncpa [#allocation3 + $0x1], 0  ;;  %s2261_s21 = smov 0   ;;  %s2263_s22 = smov 0  }
   0x5   :  { %s2265_s23 = smov 0   ;;  %s2267_s24 = smov 0  }
   0x6 LB: > { %s2282_s25 = sadd.s32 4294967295, %s2206_s24   ;;  %s1837_s26 = sadd.s32 4294967294, %s2206_s24   ;;  %s2206_s24 = sphi %s2267_s24, %s2838_s24   ;;  %s2202_s23 = sphi %s2265_s23, %s2837_s23   ;;  %s2198_s22 = sphi %s2263_s22, %s2836_s22   ;;  %s2194_s21 = sphi %s2261_s21, %s2835_s21  }
   0x7   : > { %s2286_s27 = sadd.s32 1, %s2206_s24   ;;  %s158_s28 = sadd.s32 1, %s2202_s23 }
   0x8   : > { %s155_s29 = ssub.s32 %s2206_s24, %s2286_s27  ;;  %p168_p0 = scmp.ne.s32.totalorder %s2202_s23, %s2198_s22 }
   0x9   : > { %p156_p1 = scmp.eq.s32.totalorder %s155_s29, 0  ;;  %p169_p2 = scmp.eq.s32.totalorder %s2282_s25, 7 }
   0xa   : > { %p174_p3 = scmp.ne.s32.totalorder %s2198_s22, %s2194_s21  ;;  %p175_p4 = scmp.eq.s32.totalorder %s1837_s26, 7 }
   0xb   : > { %s2297_s30 = scalar_select %p156_p1, %s2202_s23, %s158_s28  }
   0xc   : > { %p2299_p5 = por %p169_p2, %p168_p0  ;;  %p2303_p6 = por %p175_p4, %p174_p3 }
   0xd   : > { %p1838_p7 = scmp.ge.s32.totalorder %s2206_s24, 1  ;;  %p182_p8 = scmp.lt.s32.totalorder %s2206_s24, 9 }
   0xe   : > { %p2010_p9 = scmp.eq.s32.totalorder %s2282_s25, 0  ;;  %s2833_s0 = sld [smem:[#allocation8_spill]] }
   0xf   : > { %p2310_p10 = pnand %p1838_p7, %p182_p8 }
  0x11   : > { %p2002_p11 = pneg %p2310_p10 }
  0x13   : > { %p2003_p12 = pnand %p2010_p9, %p2002_p11 }
  0x14   : > { %s195_s12 = sshll.u32 %s2833_s0, 4  ;;  %s196_s12 = int_to_ptr.vmem [resolvable:$true] %s195_s12 }
  0x15   : > { %s2125_s13 = scalar_lea.vmem %s196_s12, 64  ;;  %p2127_p0 = pneg %p2003_p12 }
  0x16   : > { %p2126_p13 = scmp.ne.s32.totalorder %s196_s12, %s2125_s13  ;;  %p2133_p3 = scmp.lt.s32.totalorder %s196_s12, %s196_s12 }
  0x17   : > { %p2134_p4 = scmp.lt.s32.totalorder %s2125_s13, %s2125_s13 }
  0x18   : > { %p2128_p1 = pnand %p2127_p0, %p2126_p13 }
  0x19   : > { %p2135_p7 = por %p2134_p4, %p2133_p3 }
  0x1a   : > { %p2129_p2 = pneg %p2128_p1 }
  0x1c   : > { %p2136_p8 = pnand %p2135_p7, %p2129_p2 }
  0x1e   : > { %2139 = shalt.err (!%p2136_p8)
}
  0x1f   : > { %s2208_s14 = smov [#allocation2]   ;;  %228 = sbr.rel (%p2310_p10) target bundleno = 5190 (0x1446), region = 44 }
  0x20   : > { %2005 = dma.vmem_to_smem (!%p2003_p12), %s196_s12, 64, %s2208_s14, [#allocation4]  }
  0x26   : > { %2185 = dma.done.wait (%p2010_p9), [#allocation4], 64  }
  0x27   : > { %2187 = vsyncadd (%p2010_p9), [#allocation4], 4294967232 }
  0x28   : > { %234 = sfence }
  0x29   : > { %p259_p11 = scmp.lt.s32.totalorder %s2282_s25, 7  ;;  %v2104_v0 = vld [vmem:[%s2822_s2] sm:$0xff]   ;;  %vm286_vm0 = vcmask 130048   ;;  %v2105_v4 = vld [vmem:[%s2822_s2 + $0x8] sm:$0xff]   ;;  %s269_s9 = sld [smem:[#allocation2]]  ;;  %vm375_vm5 = vcmask 7168  }
  0x2a   : > { %1920 = vmatprep.mubr.msk.bf16.mxu0 %vm286_vm0, %v2104_v0  ;;  %v2209_v57 = vmov 0   ;;  %s2210_s16 = smov 0.0   ;;  %v421_v61 = vld [vmem:[%s2824_s4] sm:$0xff]  ;;  %v422_v62 = vld [vmem:[%s2824_s4 + $0x8] sm:$0xff]  ;;  %v423_v63 = vld [vmem:[%s2824_s4 + $0x10] sm:$0xff]  ;;  %vm2218_vm12 = vmmov 0  }
  0x2b   : > { %s260_s17 = scalar_select %p259_p11, %s2282_s25, 7  ;;  %2062 = vset.pattern.permute.xlu0 %v2209_v57  ;;  %2063 = vset.pattern.permute.xlu1 %v2209_v57  ;;  %vm714_vm13 = vcmask 261120  }
  0x2c   : > { %s2221_s0 = smov 4  }
  0x2d   : > { %s1898_s18 = sshll.u32 %s260_s17, 4 }
  0x2e   : > { %s263_s26 = scalar_lea.vmem %s2821_s1, %s1898_s18 }
  0x2f   : > { %v2336_v1 = vld [vmem:[%s263_s26] sm:$0xff]  ;;  %v2338_v2 = vld [vmem:[%s263_s26 + $0x8] sm:$0xff]  ;;  %v346_v5 = vstv %s269_s9 }
  0x30   : > { %v275_v3 = vpack.c.bf16 %v2338_v2, %v2336_v1 }
  0x32   : > { %1918 = vmatprep.subr.bf16.mxu0 %v275_v3 }
  0x33   : > { %1919 = vmatpush3.bf16.msra.mxu0 %v275_v3 }
  0x36   : > { %1921 = vmatmul.mubr.msk.bf16.vlgmr.msra.gmra.mrb[0].mxu0 %vm286_vm0, %v2105_v4 }
 0x109   : > { %v1922_v6 = vpop.f32.mrb[0].mxu0 }
 0x10a   : > { %vm344_vm1 = vcmp.ge.f32.partialorder %v1922_v6, 0.0  ;;  %v349_v7 = vmul.f32 %v1922_v6, %v346_v5  ;;  %v327_v8 = vpop.f32.mrb[1].mxu0 }
 0x10b   : > { %vm342_vm2 = vcmp.ge.f32.partialorder %v327_v8, 0.0  ;;  %v347_v9 = vmul.f32 %v346_v5, %v327_v8  ;;  %v1923_v10 = vpop.f32.mrb[2].mxu0 }
 0x10c   : > { %v350_v11 = vmul.f32 %v1923_v10, %v346_v5  ;;  %v330_v12 = vpop.f32.mrb[3].mxu0  ;;  %v2346_v13 = vsel %vm344_vm1, %v1922_v6, %v349_v7  ;;  %vm345_vm3 = vcmp.ge.f32.partialorder %v1923_v10, 0.0 }
 0x10d   : > { %v348_v14 = vmul.f32 %v346_v5, %v330_v12  ;;  %363 = vadd.xlane.f32.xlu1 %v2346_v13  ;;  %v2349_v15 = vsel %vm342_vm2, %v327_v8, %v347_v9  ;;  %vm343_vm4 = vcmp.ge.f32.partialorder %v330_v12, 0.0  ;;  %v357_v21 = vmul.f32 %v2346_v13, %v2346_v13  ;;  %v424_v9 = vld [vmem:[%s2824_s4 + $0x18] sm:$0xff] }
 0x10e   : > { %359 = vadd.xlane.f32.xlu0 %v2349_v15  ;;  %v2352_v16 = vsel %vm345_vm3, %v1923_v10, %v350_v11  ;;  %v355_v18 = vmul.f32 %v2349_v15, %v2349_v15 }
 0x10f   : > { %v2355_v17 = vsel %vm343_vm4, %v330_v12, %v348_v14  ;;  %v358_v20 = vmul.f32 %v2352_v16, %v2352_v16  ;;  %v2212_v14 = vmov 1  }
 0x110   : > { %v356_v19 = vmul.f32 %v2355_v17, %v2355_v17 }
 0x111   : > { %365 = vadd.xlane.f32.xlu1 %v2352_v16 }
 0x112   : > { %361 = vadd.xlane.f32.xlu0 %v2355_v17 }
 0x115   : > { %367 = vadd.xlane.f32.xlu1 %v355_v18 }
 0x116   : > { %369 = vadd.xlane.f32.xlu0 %v356_v19 }
 0x119   : > { %373 = vadd.xlane.f32.xlu1 %v358_v20 }
 0x11a   : > { %371 = vadd.xlane.f32.xlu0 %v357_v21 }
 0x19a   : > { %v364_v22 = vpop.xlane.xlu1 %363 }
 0x19b   : > { %v360_v23 = vpop.xlane.xlu0 %359  ;;  %v379_v29 = vsel %vm375_vm5, %v364_v22, 0.0 }
 0x19c   : > { %v376_v26 = vsel %vm375_vm5, %v360_v23, 0.0 }
 0x19e   : > { %v366_v24 = vpop.xlane.xlu1 %365 }
 0x19f   : > { %v362_v25 = vpop.xlane.xlu0 %361  ;;  %v381_v33 = vsel %vm375_vm5, %v366_v24, 0.0 }
 0x1a0   : > { %v377_v27 = vsel %vm375_vm5, %v362_v25, 0.0 }
 0x1a1   : > { %v378_v28 = vadd.f32 %v377_v27, %v376_v26  ;;  %v2213_v26 = vmov 2   ;;  %v2214_v27 = vmov 4  }
 0x1a2   : > { %v368_v30 = vpop.xlane.xlu1 %367 }
 0x1a3   : > { %v370_v31 = vpop.xlane.xlu0 %369  ;;  %v380_v32 = vadd.f32 %v379_v29, %v378_v28  ;;  %v395_v34 = vsel %vm375_vm5, %v368_v30, 0.0  ;;  %v2215_v28 = vmov 3  }
 0x1a4   : > { %v396_v35 = vsel %vm375_vm5, %v370_v31, 0.0 }
 0x1a5   : > { %v382_v36 = vadd.f32 %v381_v33, %v380_v32  ;;  %v397_v37 = vadd.f32 %v396_v35, %v395_v34 }
 0x1a6   : > { %v374_v38 = vpop.xlane.xlu1 %373 }
 0x1a7   : > { %383 = vadd.xlane.f32.xlu0 %v382_v36  ;;  %v372_v39 = vpop.xlane.xlu0 %371  ;;  %v400_v42 = vsel %vm375_vm5, %v374_v38, 0.0 }
 0x1a8   : > { %v398_v40 = vsel %vm375_vm5, %v372_v39, 0.0 }
 0x1a9   : > { %v399_v41 = vadd.f32 %v398_v40, %v397_v37 }
 0x1ab   : > { %v401_v43 = vadd.f32 %v400_v42, %v399_v41 }
 0x1ad   : > { %402 = vadd.xlane.f32.xlu1 %v401_v43 }
 0x234   : > { %v384_v44 = vpop.xlane.xlu0 %383 }
 0x235   : > { %v385_v45 = vrot.slane %v384_v44, 4 }
 0x237   : > { %v386_v46 = vadd.f32 %v385_v45, %v384_v44 }
 0x239   : > { %v387_v47 = vrot.slane %v386_v46, 2 }
 0x23a   : > { %v403_v48 = vpop.xlane.xlu1 %402 }
 0x23b   : > { %v404_v49 = vrot.slane %v403_v48, 4  ;;  %v388_v50 = vadd.f32 %v387_v47, %v386_v46 }
 0x23d   : > { %v405_v51 = vadd.f32 %v404_v49, %v403_v48  ;;  %v389_v52 = vrot.slane %v388_v50, 1 }
 0x23f   : > { %v390_v53 = vadd.f32 %v389_v52, %v388_v50  ;;  %v406_v54 = vrot.slane %v405_v51, 2 }
 0x241   : > { %1960 = vpush %v390_v53  ;;  %v407_v55 = vadd.f32 %v406_v54, %v405_v51  ;;  %v267_v51 = vlaneseq }
 0x243   : > { %v408_v56 = vrot.slane %v407_v55, 1  ;;  %v2415_v53 = vand.u32 127, %v267_v51 }
 0x245   : > { %v409_v58 = vadd.f32 %v408_v56, %v407_v55  ;;  %vm511_vm6 = vcmp.ge.s32.totalorder %v2415_v53, 1  ;;  %vm576_vm7 = vcmp.lt.s32.totalorder %v2415_v53, 127  ;;  %vm1003_vm3 = vcmp.ge.s32.totalorder %v2415_v53, 2 }
 0x246   : > { %vm1068_vm4 = vcmp.lt.s32.totalorder %v2415_v53, 126 }
 0x247   : > { %1962 = vpush %v409_v58 }
 0x272   : > { %s1961_s10 = spop %1960 }
 0x273   : > { %s394_s11 = smul.f32 0.00024414063, %s1961_s10 }
 0x275   : > { %s414_s12 = smul.f32 %s394_s11, %s394_s11  ;;  %v430_v5 = vstv %s394_s11  ;;  %s2216_s11 = smov 127  }
 0x278   : > { %s1963_s13 = spop %1962 }
 0x279   : > { %s413_s14 = smul.f32 0.00024414063, %s1963_s13 }
 0x27b   : > { %s415_s15 = ssub.f32 %s413_s14, %s414_s12  ;;  %s2827_s14 = smov 1  }
 0x27d   : > { %s416_s17 = smax.f32 %s2210_s16, %s415_s15  ;;  %s1846_s15 = sld [smem:[#allocation2 + $0x1]] }
 0x27e   : > { %s417_s18 = sadd.f32 1e-08, %s416_s17 }
 0x280   : > { %v418_v59 = vstv %s417_s18 }
 0x281   : > { %2113 = vrsqrt.f32 %v418_v59 }
 0x28b   : > { %v2114_v60 = vpop.eup %2113 }
 0x28c   : > { %1964 = vpush %v2114_v60 }
 0x2bd   : > { %s1965_s29 = spop %1964 }
 0x2be   : > { %v425_v0 = vstv %s1965_s29 }
 0x2bf   : > { %v426_v3 = vmul.f32 %v425_v0, %v421_v61  ;;  %v427_v4 = vmul.f32 %v425_v0, %v422_v62  ;;  %v428_v6 = vmul.f32 %v425_v0, %v423_v63  ;;  %v429_v10 = vmul.f32 %v425_v0, %v424_v9 }
 0x2c1   : > { %v432_v7 = vmul.f32 %v430_v5, %v427_v4  ;;  %v431_v8 = vmul.f32 %v430_v5, %v426_v3  ;;  %v433_v11 = vmul.f32 %v430_v5, %v428_v6  ;;  %v434_v12 = vmul.f32 %v430_v5, %v429_v10 }
 0x2c3   : > { %441 = vrot.lane.b32.xlu1 %v432_v7, %s2827_s14  ;;  %439 = vrot.lane.b32.xlu0 %v431_v8, %s2827_s14  ;;  %v609_v8 = vstv %s1846_s15 }
 0x2c7   : > { %443 = vrot.lane.b32.xlu1 %v433_v11, %s2827_s14  ;;  %457 = vperm.xlu0 %2062, %v426_v3  }
 0x2cb   : > { %445 = vrot.lane.b32.xlu1 %v434_v12, %s2827_s14  ;;  %2064 = vset.pattern.permute.xlu0 %v2212_v14 }
 0x2cf   : > { %462 = vperm.xlu1 %2063, %v427_v4  }
 0x2d3   : > { %467 = vperm.xlu1 %2063, %v428_v6  }
 0x2d7   : > { %472 = vperm.xlu1 %2063, %v429_v10  }
 0x2db   : > { %2065 = vset.pattern.permute.xlu1 %v2212_v14 }
 0x335   : > { %v442_v18 = vpop.permute.xlu1 %441  ;;  %v440_v19 = vpop.permute.xlu0 %439 }
 0x336   : > { %v452_v20 = vsub.f32 %v422_v62, %v442_v18  ;;  %v451_v21 = vsub.f32 %v421_v61, %v440_v19 }
 0x338   : > { %486 = vperm.xlu1 %2065, %v452_v20   ;;  %481 = vperm.xlu0 %2064, %v451_v21  }
 0x339   : > { %v444_v22 = vpop.permute.xlu1 %443 }
 0x33a   : > { %v453_v23 = vsub.f32 %v423_v63, %v444_v22 }
 0x33c   : > { %491 = vperm.xlu0 %2064, %v453_v23  }
 0x33d   : > { %v446_v24 = vpop.permute.xlu1 %445 }
 0x33e   : > { %v454_v25 = vsub.f32 %v424_v9, %v446_v24 }
 0x340   : > { %496 = vperm.xlu1 %2065, %v454_v25   ;;  %2066 = vset.pattern.permute.xlu0 %v2213_v26 }
 0x341   : > { %518 = vperm.xlu0 %2066, %v421_v61  }
 0x344   : > { %2067 = vset.pattern.permute.xlu1 %v2213_v26 }
 0x345   : > { %523 = vperm.xlu1 %2067, %v422_v62   ;;  %2071 = vset.pattern.permute.xlu0 %v2214_v27 }
 0x346   : > { %582 = vperm.xlu0 %2071, %v421_v61   ;;  %v458_v31 = vpop.permute.xlu0 %457 }
 0x347   : > { %v475_v33 = vmul.f32 %v458_v31, %v2349_v15 }
 0x349   : > { %2068 = vset.pattern.permute.xlu1 %v2215_v28 }
 0x34a   : > { %545 = vperm.xlu1 %2068, %v421_v61   ;;  %2072 = vset.pattern.permute.xlu0 %v2215_v28 }
 0x34b   : > { %549 = vperm.xlu0 %2072, %v422_v62  }
 0x34e   : > { %2069 = vset.pattern.permute.xlu1 %v2213_v26  ;;  %v463_v29 = vpop.permute.xlu1 %462 }
 0x34f   : > { %528 = vperm.xlu1 %2069, %v423_v63   ;;  %557 = vperm.xlu0 %2072, %v424_v9   ;;  %v476_v34 = vmul.f32 %v463_v29, %v2355_v17 }
 0x352   : > { %v468_v30 = vpop.permute.xlu1 %467 }
 0x353   : > { %2070 = vset.pattern.permute.xlu1 %v2215_v28  ;;  %2076 = vset.pattern.permute.xlu0 %v2209_v57  ;;  %v477_v39 = vmul.f32 %v468_v30, %v2346_v13 }
 0x354   : > { %553 = vperm.xlu1 %2070, %v423_v63  }
 0x356   : > { %v473_v32 = vpop.permute.xlu1 %472 }
 0x357   : > { %v478_v42 = vmul.f32 %v473_v32, %v2352_v16 }
 0x358   : > { %2073 = vset.pattern.permute.xlu1 %v2214_v27 }
 0x359   : > { %586 = vperm.xlu1 %2073, %v422_v62  }
 0x35d   : > { %2074 = vset.pattern.permute.xlu1 %v2213_v26 }
 0x35e   : > { %533 = vperm.xlu1 %2074, %v424_v9  }
 0x362   : > { %2075 = vset.pattern.permute.xlu1 %v2214_v27 }
 0x363   : > { %590 = vperm.xlu1 %2075, %v423_v63  }
 0x367   : > { %594 = vperm.xlu1 %2075, %v424_v9  }
 0x36b   : > { %2077 = vset.pattern.permute.xlu1 %v2209_v57 }
 0x3b7   : > { %v487_v35 = vpop.permute.xlu1 %486  ;;  %v482_v36 = vpop.permute.xlu0 %481 }
 0x3b8   : > { %v500_v37 = vadd.f32 %v487_v35, %v476_v34  ;;  %v499_v38 = vadd.f32 %v482_v36, %v475_v33 }
 0x3ba   : > { %505 = vrot.lane.b32.xlu0 %v500_v37, %s2827_s14  ;;  %503 = vrot.lane.b32.xlu1 %v499_v38, %s2827_s14 }
 0x3bb   : > { %v492_v40 = vpop.permute.xlu0 %491 }
 0x3bc   : > { %v501_v41 = vadd.f32 %v492_v40, %v477_v39 }
 0x3be   : > { %568 = vrot.lane.b32.xlu1 %v499_v38, %s2216_s11  ;;  %507 = vrot.lane.b32.xlu0 %v501_v41, %s2827_s14 }
 0x3bf   : > { %v497_v15 = vpop.permute.xlu1 %496 }
 0x3c0   : > { %v502_v17 = vadd.f32 %v497_v15, %v478_v42  ;;  %v519_v47 = vpop.permute.xlu0 %518 }
 0x3c2   : > { %509 = vrot.lane.b32.xlu1 %v502_v17, %s2827_s14  ;;  %570 = vrot.lane.b32.xlu0 %v500_v37, %s2216_s11  ;;  %s2219_s14 = smov 2  }
 0x3c4   : > { %v524_v13 = vpop.permute.xlu1 %523 }
 0x3c5   : > { %v583_v49 = vpop.permute.xlu0 %582 }
 0x3c6   : > { %574 = vrot.lane.b32.xlu1 %v502_v17, %s2216_s11  ;;  %572 = vrot.lane.b32.xlu0 %v501_v41, %s2216_s11 }
 0x3c9   : > { %v546_v43 = vpop.permute.xlu1 %545 }
 0x3ca   : > { %v550_v50 = vpop.permute.xlu0 %549  ;;  %v560_v61 = vmul.f32 %v546_v43, %v499_v38 }
 0x3cb   : > { %v561_v7 = vmul.f32 %v550_v50, %v500_v37 }
 0x3ce   : > { %v529_v44 = vpop.permute.xlu1 %528  ;;  %v558_v54 = vpop.permute.xlu0 %557 }
 0x3cf   : > { %v563_v24 = vmul.f32 %v558_v54, %v502_v17 }
 0x3d3   : > { %v554_v45 = vpop.permute.xlu1 %553 }
 0x3d4   : > { %v562_v25 = vmul.f32 %v554_v45, %v501_v41 }
 0x3d8   : > { %v587_v46 = vpop.permute.xlu1 %586 }
 0x3dd   : > { %v534_v48 = vpop.permute.xlu1 %533 }
 0x3e2   : > { %v591_v16 = vpop.permute.xlu1 %590 }
 0x3e6   : > { %v595_v52 = vpop.permute.xlu1 %594 }
 0x42c   : > { %v504_v55 = vpop.permute.xlu1 %503  ;;  %v506_v56 = vpop.permute.xlu0 %505 }
 0x42d   : > { %v512_v58 = vsel %vm511_vm6, %v504_v55, 0.0  ;;  %v513_v60 = vsel %vm511_vm6, %v506_v56, 0.0 }
 0x42e   : > { %v536_v59 = vmul.f32 %v519_v47, %v512_v58  ;;  %v537_v0 = vmul.f32 %v524_v13, %v513_v60 }
 0x430   : > { %v569_v62 = vpop.permute.xlu1 %568  ;;  %v508_v63 = vpop.permute.xlu0 %507  ;;  %v564_v4 = vadd.f32 %v560_v61, %v536_v59  ;;  %v565_v12 = vadd.f32 %v561_v7, %v537_v0 }
 0x431   : > { %v577_v3 = vsel %vm576_vm7, %v569_v62, 0.0  ;;  %v514_v6 = vsel %vm511_vm6, %v508_v63, 0.0 }
 0x432   : > { %v597_v5 = vmul.f32 %v583_v49, %v577_v3  ;;  %v538_v18 = vmul.f32 %v529_v44, %v514_v6 }
 0x434   : > { %v601_v9 = vadd.f32 %v597_v5, %v564_v4  ;;  %v510_v10 = vpop.permute.xlu1 %509  ;;  %v571_v11 = vpop.permute.xlu0 %570  ;;  %v566_v33 = vadd.f32 %v562_v25, %v538_v18  ;;  %v2217_v25 = vmov 0.0  }
 0x435   : > { %v515_v19 = vsel %vm511_vm6, %v510_v10, 0.0  ;;  %v578_v20 = vsel %vm576_vm7, %v571_v11, 0.0  ;;  %1924 = vmatprep.subr.bf16.mxu1 %v2217_v25  ;;  %1928 = vmatprep.mubr.msk.bf16.mxu1 %vm2218_vm12, %v2217_v25 }
 0x436   : > { %v539_v21 = vmul.f32 %v534_v48, %v515_v19  ;;  %v598_v22 = vmul.f32 %v587_v46, %v578_v20  ;;  %vm605_vm8 = vcmp.ge.f32.partialorder %v601_v9, 0.0  ;;  %v610_v23 = vmul.f32 %v609_v8, %v601_v9 }
 0x438   : > { %v602_v29 = vadd.f32 %v598_v22, %v565_v12  ;;  %v575_v30 = vpop.permute.xlu1 %574  ;;  %v573_v31 = vpop.permute.xlu0 %572  ;;  %v2431_v32 = vsel %vm605_vm8, %v601_v9, %v610_v23  ;;  %v567_v34 = vadd.f32 %v563_v24, %v539_v21 }
 0x439   : > { %v580_v35 = vsel %vm576_vm7, %v575_v30, 0.0  ;;  %v579_v36 = vsel %vm576_vm7, %v573_v31, 0.0  ;;  %622 = vadd.xlane.f32.xlu0 %v2431_v32  ;;  %v618_v45 = vmul.f32 %v2431_v32, %v2431_v32 }
 0x43a   : > { %v600_v37 = vmul.f32 %v595_v52, %v580_v35  ;;  %v599_v38 = vmul.f32 %v591_v16, %v579_v36  ;;  %vm606_vm9 = vcmp.ge.f32.partialorder %v602_v29, 0.0  ;;  %v611_v39 = vmul.f32 %v609_v8, %v602_v29 }
 0x43c   : > { %v604_v40 = vadd.f32 %v600_v37, %v567_v34  ;;  %v603_v41 = vadd.f32 %v599_v38, %v566_v33  ;;  %v2438_v42 = vsel %vm606_vm9, %v602_v29, %v611_v39  ;;  %v697_v33 = vld [vmem:[%s2825_s5] sm:$0xff]  ;;  %v698_v34 = vld [vmem:[%s2825_s5 + $0x8] sm:$0xff] }
 0x43d   : > { %624 = vadd.xlane.f32.xlu1 %v2438_v42  ;;  %v619_v46 = vmul.f32 %v2438_v42, %v2438_v42 }
 0x43e   : > { %vm608_vm10 = vcmp.ge.f32.partialorder %v604_v40, 0.0  ;;  %v613_v15 = vmul.f32 %v609_v8, %v604_v40  ;;  %vm607_vm11 = vcmp.ge.f32.partialorder %v603_v41, 0.0  ;;  %v612_v17 = vmul.f32 %v609_v8, %v603_v41 }
 0x440   : > { %v2441_v13 = vsel %vm608_vm10, %v604_v40, %v613_v15  ;;  %v2443_v43 = vsel %vm607_vm11, %v603_v41, %v612_v17 }
 0x441   : > { %628 = vadd.xlane.f32.xlu1 %v2441_v13  ;;  %626 = vadd.xlane.f32.xlu0 %v2443_v43  ;;  %v621_v44 = vmul.f32 %v2441_v13, %v2441_v13  ;;  %v620_v47 = vmul.f32 %v2443_v43, %v2443_v43 }
 0x445   : > { %636 = vadd.xlane.f32.xlu1 %v621_v44  ;;  %630 = vadd.xlane.f32.xlu0 %v618_v45 }
 0x449   : > { %632 = vadd.xlane.f32.xlu0 %v619_v46 }
 0x44d   : > { %634 = vadd.xlane.f32.xlu0 %v620_v47 }
 0x4c6   : > { %v623_v48 = vpop.xlane.xlu0 %622 }
 0x4c7   : > { %v638_v50 = vsel %vm375_vm5, %v623_v48, 0.0 }
 0x4ca   : > { %v625_v49 = vpop.xlane.xlu1 %624 }
 0x4cb   : > { %v639_v16 = vsel %vm375_vm5, %v625_v49, 0.0 }
 0x4cc   : > { %v640_v51 = vadd.f32 %v639_v16, %v638_v50 }
 0x4ce   : > { %v629_v52 = vpop.xlane.xlu1 %628  ;;  %v627_v54 = vpop.xlane.xlu0 %626 }
 0x4cf   : > { %v641_v55 = vsel %vm375_vm5, %v627_v54, 0.0  ;;  %v643_v58 = vsel %vm375_vm5, %v629_v52, 0.0 }
 0x4d0   : > { %v642_v56 = vadd.f32 %v641_v55, %v640_v51 }
 0x4d2   : > { %v631_v59 = vpop.xlane.xlu0 %630  ;;  %v644_v60 = vadd.f32 %v643_v58, %v642_v56  ;;  %v637_v0 = vpop.xlane.xlu1 %636 }
 0x4d3   : > { %v657_v63 = vsel %vm375_vm5, %v631_v59, 0.0  ;;  %v662_v7 = vsel %vm375_vm5, %v637_v0, 0.0  ;;  %v2108_v59 = vld [vmem:[%s2822_s2 + $0x18] sm:$0xff]  }
 0x4d4   : > { %645 = vadd.xlane.f32.xlu0 %v644_v60 }
 0x4d6   : > { %v633_v61 = vpop.xlane.xlu0 %632 }
 0x4d7   : > { %v658_v62 = vsel %vm375_vm5, %v633_v61, 0.0 }
 0x4d8   : > { %v659_v3 = vadd.f32 %v658_v62, %v657_v63 }
 0x4da   : > { %v635_v4 = vpop.xlane.xlu0 %634 }
 0x4db   : > { %v660_v5 = vsel %vm375_vm5, %v635_v4, 0.0 }
 0x4dc   : > { %v661_v6 = vadd.f32 %v660_v5, %v659_v3 }
 0x4de   : > { %v663_v8 = vadd.f32 %v662_v7, %v661_v6 }
 0x4e0   : > { %664 = vadd.xlane.f32.xlu1 %v663_v8 }
 0x4ea   : > { %701 = vperm.xlu0 %2076, %v697_v33  }
 0x4f1   : > { %706 = vperm.xlu1 %2077, %v698_v34  }
 0x561   : > { %v646_v9 = vpop.xlane.xlu0 %645 }
 0x562   : > { %v647_v10 = vrot.slane %v646_v9, 4 }
 0x564   : > { %v648_v11 = vadd.f32 %v647_v10, %v646_v9 }
 0x566   : > { %v649_v12 = vrot.slane %v648_v11, 2 }
 0x568   : > { %v650_v18 = vadd.f32 %v649_v12, %v648_v11 }
 0x56a   : > { %v651_v19 = vrot.slane %v650_v18, 1 }
 0x56c   : > { %v652_v20 = vadd.f32 %v651_v19, %v650_v18 }
 0x56d   : > { %v665_v21 = vpop.xlane.xlu1 %664 }
 0x56e   : > { %v666_v22 = vrot.slane %v665_v21, 4  ;;  %1966 = vpush %v652_v20 }
 0x570   : > { %v667_v23 = vadd.f32 %v666_v22, %v665_v21 }
 0x571   : > { %v707_v49 = vpop.permute.xlu1 %706 }
 0x572   : > { %v668_v24 = vrot.slane %v667_v23, 2 }
 0x574   : > { %v669_v29 = vadd.f32 %v668_v24, %v667_v23 }
 0x576   : > { %v670_v30 = vrot.slane %v669_v29, 1 }
 0x578   : > { %v671_v31 = vadd.f32 %v670_v30, %v669_v29 }
 0x57a   : > { %1968 = vpush %v671_v31 }
 0x59f   : > { %s1967_s26 = spop %1966 }
 0x5a0   : > { %s656_s28 = smul.f32 0.00024414063, %s1967_s26 }
 0x5a2   : > { %s676_s29 = smul.f32 %s656_s28, %s656_s28  ;;  %v683_v37 = vstv %s656_s28 }
 0x5a3   : > { %v684_v38 = vsub.f32 %v2431_v32, %v683_v37  ;;  %v685_v39 = vsub.f32 %v2438_v42, %v683_v37  ;;  %v686_v41 = vsub.f32 %v2443_v43, %v683_v37  ;;  %v687_v15 = vsub.f32 %v2441_v13, %v683_v37  ;;  %v2106_v32 = vld [vmem:[%s2823_s3] sm:$0xff]   ;;  %v2107_v42 = vld [vmem:[%s2822_s2 + $0x10] sm:$0xff]   ;;  %v702_v13 = vpop.permute.xlu0 %701 }
 0x5a4   : > { %1934 = vmatprep.mubr.msk.bf16.mxu0 %vm286_vm0, %v2107_v42 }
 0x5ab   : > { %s1969_s9 = spop %1968 }
 0x5ac   : > { %s675_s10 = smul.f32 0.00024414063, %s1969_s9 }
 0x5ae   : > { %s677_s12 = ssub.f32 %s675_s10, %s676_s29  ;;  %s1853_s29 = sld [smem:[#allocation2 + $0x80]] }
 0x5b0   : > { %s678_s13 = smax.f32 %s2210_s16, %s677_s12 }
 0x5b1   : > { %s679_s11 = sadd.f32 1e-08, %s678_s13 }
 0x5b3   : > { %v680_v35 = vstv %s679_s11 }
 0x5b4   : > { %2115 = vrsqrt.f32 %v680_v35  ;;  %v838_v60 = vstv %s1853_s29 }
 0x5be   : > { %v2116_v36 = vpop.eup %2115 }
 0x5bf   : > { %1970 = vpush %v2116_v36 }
 0x5f0   : > { %s1971_s15 = spop %1970 }
 0x5f1   : > { %v688_v40 = vstv %s1971_s15 }
 0x5f2   : > { %v689_v17 = vmul.f32 %v688_v40, %v684_v38  ;;  %v690_v44 = vmul.f32 %v688_v40, %v685_v39  ;;  %v691_v45 = vmul.f32 %v688_v40, %v686_v41  ;;  %v692_v46 = vmul.f32 %v688_v40, %v687_v15 }
 0x5f4   : > { %v693_v47 = vpack.c.bf16 %v690_v44, %v689_v17  ;;  %v694_v48 = vpack.c.bf16 %v692_v46, %v691_v45 }
 0x5f6   : > { %1925 = vmatpush3.bf16.msra.mxu1 %v693_v47 }
 0x5f7   : > { %1926 = vmatprep.subr.bf16.mxu1 %v2217_v25 }
 0x5fa   : > { %1927 = vmatpush3.bf16.msra.mxu1 %v694_v48 }
 0x5fb   : > { %1938 = vmatprep.subr.bf16.mxu1 %v2217_v25 }
 0x5fd   : > { %1929 = vmatmul.mubr.msk.bf16.vlgmr.msra.gmra.mrb[0].mxu1 %vm714_vm13, %v2106_v32 }
 0x5fe   : > { %1942 = vmatprep.mubr.msk.bf16.mxu1 %vm2218_vm12, %v2217_v25 }
 0x6d0   : > { %v752_v43 = vpop.f32.mrb[0].mxu1 }
 0x6d1   : > { %v753_v16 = vadd.f32 %v752_v43, %v702_v13  ;;  %v1930_v50 = vpop.f32.mrb[1].mxu1 }
 0x6d2   : > { %v755_v51 = vpop.f32.mrb[2].mxu1 }
 0x6d3   : > { %v756_v52 = vadd.f32 %v755_v51, %v707_v49  ;;  %v1931_v54 = vpop.f32.mrb[3].mxu1  ;;  %v2490_v55 = vadd.f32 %v753_v16, %v2336_v1 }
 0x6d5   : > { %v2493_v56 = vadd.f32 %v756_v52, %v2338_v2 }
 0x6d7   : > { %v768_v58 = vpack.c.bf16 %v2493_v56, %v2490_v55 }
 0x6d9   : > { %1932 = vmatprep.subr.bf16.mxu0 %v768_v58 }
 0x6da   : > { %1933 = vmatpush3.bf16.msra.mxu0 %v768_v58 }
 0x6dd   : > { %1935 = vmatmul.mubr.msk.bf16.vlgmr.msra.gmra.mrb[4].mxu0 %vm286_vm0, %v2108_v59 }
 0x7b0   : > { %v1936_v61 = vpop.f32.mrb[4].mxu0 }
 0x7b1   : > { %v819_v62 = vpop.f32.mrb[5].mxu0  ;;  %v841_v0 = vmul.f32 %v1936_v61, %v838_v60  ;;  %vm836_vm1 = vcmp.ge.f32.partialorder %v1936_v61, 0.0 }
 0x7b2   : > { %vm834_vm14 = vcmp.ge.f32.partialorder %v819_v62, 0.0  ;;  %v839_v1 = vmul.f32 %v838_v60, %v819_v62  ;;  %v1937_v63 = vpop.f32.mrb[6].mxu0 }
 0x7b3   : > { %v822_v2 = vpop.f32.mrb[7].mxu0  ;;  %v842_v6 = vmul.f32 %v1937_v63, %v838_v60  ;;  %v2507_v7 = vsel %vm836_vm1, %v1936_v61, %v841_v0  ;;  %vm837_vm2 = vcmp.ge.f32.partialorder %v1937_v63, 0.0  ;;  %v1864_v61 = vld [vmem:[%s2824_s4 + $0x28] sm:$0xff] }
 0x7b4   : > { %vm835_vm15 = vcmp.ge.f32.partialorder %v822_v2, 0.0  ;;  %v840_v3 = vmul.f32 %v838_v60, %v822_v2  ;;  %v2501_v4 = vsel %vm834_vm14, %v819_v62, %v839_v1  ;;  %v849_v9 = vmul.f32 %v2507_v7, %v2507_v7  ;;  %v1863_v60 = vld [vmem:[%s2824_s4 + $0x20] sm:$0xff]  ;;  %v1865_v62 = vld [vmem:[%s2824_s4 + $0x30] sm:$0xff]  ;;  %v1866_v1 = vld [vmem:[%s2824_s4 + $0x38] sm:$0xff] }
 0x7b5   : > { %851 = vadd.xlane.f32.xlu1 %v2501_v4  ;;  %v2510_v8 = vsel %vm837_vm2, %v1937_v63, %v842_v6  ;;  %v847_v10 = vmul.f32 %v2501_v4, %v2501_v4  ;;  %vm1496_vm14 = vcmp.ge.s32.totalorder %v2415_v53, 4 }
 0x7b6   : > { %v2504_v5 = vsel %vm835_vm15, %v822_v2, %v840_v3  ;;  %v850_v12 = vmul.f32 %v2510_v8, %v2510_v8  ;;  %vm1561_vm15 = vcmp.lt.s32.totalorder %v2415_v53, 124 }
 0x7b7   : > { %853 = vadd.xlane.f32.xlu0 %v2504_v5  ;;  %v848_v11 = vmul.f32 %v2504_v5, %v2504_v5 }
 0x7b9   : > { %855 = vadd.xlane.f32.xlu1 %v2507_v7 }
 0x7bd   : > { %857 = vadd.xlane.f32.xlu1 %v2510_v8 }
 0x7c1   : > { %863 = vadd.xlane.f32.xlu1 %v849_v9 }
 0x7c5   : > { %859 = vadd.xlane.f32.xlu1 %v847_v10 }
 0x7c9   : > { %861 = vadd.xlane.f32.xlu1 %v848_v11 }
 0x7cd   : > { %865 = vadd.xlane.f32.xlu1 %v850_v12 }
 0x842   : > { %v852_v18 = vpop.xlane.xlu1 %851 }
 0x843   : > { %v867_v20 = vsel %vm375_vm5, %v852_v18, 0.0 }
 0x844   : > { %v854_v19 = vpop.xlane.xlu0 %853 }
 0x845   : > { %v868_v21 = vsel %vm375_vm5, %v854_v19, 0.0 }
 0x846   : > { %v869_v22 = vadd.f32 %v868_v21, %v867_v20  ;;  %v856_v23 = vpop.xlane.xlu1 %855 }
 0x847   : > { %v870_v24 = vsel %vm375_vm5, %v856_v23, 0.0 }
 0x848   : > { %v871_v29 = vadd.f32 %v870_v24, %v869_v22 }
 0x84a   : > { %v858_v30 = vpop.xlane.xlu1 %857 }
 0x84b   : > { %v872_v31 = vsel %vm375_vm5, %v858_v30, 0.0 }
 0x84c   : > { %v873_v33 = vadd.f32 %v872_v31, %v871_v29 }
 0x84e   : > { %v864_v34 = vpop.xlane.xlu1 %863  ;;  %874 = vadd.xlane.f32.xlu0 %v873_v33 }
 0x84f   : > { %v889_v40 = vsel %vm375_vm5, %v864_v34, 0.0 }
 0x852   : > { %v860_v35 = vpop.xlane.xlu1 %859 }
 0x853   : > { %v886_v37 = vsel %vm375_vm5, %v860_v35, 0.0 }
 0x856   : > { %v862_v36 = vpop.xlane.xlu1 %861 }
 0x857   : > { %v887_v38 = vsel %vm375_vm5, %v862_v36, 0.0 }
 0x858   : > { %v888_v39 = vadd.f32 %v887_v38, %v886_v37 }
 0x85a   : > { %v866_v41 = vpop.xlane.xlu1 %865  ;;  %v890_v15 = vadd.f32 %v889_v40, %v888_v39 }
 0x85b   : > { %v891_v17 = vsel %vm375_vm5, %v866_v41, 0.0 }
 0x85c   : > { %v892_v44 = vadd.f32 %v891_v17, %v890_v15 }
 0x85e   : > { %893 = vadd.xlane.f32.xlu1 %v892_v44 }
 0x8db   : > { %v875_v45 = vpop.xlane.xlu0 %874 }
 0x8dc   : > { %v876_v46 = vrot.slane %v875_v45, 4 }
 0x8de   : > { %v877_v47 = vadd.f32 %v876_v46, %v875_v45 }
 0x8e0   : > { %v878_v48 = vrot.slane %v877_v47, 2 }
 0x8e2   : > { %v879_v32 = vadd.f32 %v878_v48, %v877_v47 }
 0x8e4   : > { %v880_v42 = vrot.slane %v879_v32, 1 }
 0x8e6   : > { %v881_v13 = vadd.f32 %v880_v42, %v879_v32 }
 0x8e8   : > { %1972 = vpush %v881_v13 }
 0x8eb   : > { %v894_v43 = vpop.xlane.xlu1 %893 }
 0x8ec   : > { %v895_v49 = vrot.slane %v894_v43, 4 }
 0x8ee   : > { %v896_v16 = vadd.f32 %v895_v49, %v894_v43 }
 0x8f0   : > { %v897_v50 = vrot.slane %v896_v16, 2 }
 0x8f2   : > { %v898_v51 = vadd.f32 %v897_v50, %v896_v16 }
 0x8f4   : > { %v899_v52 = vrot.slane %v898_v51, 1 }
 0x8f6   : > { %v900_v54 = vadd.f32 %v899_v52, %v898_v51 }
 0x8f8   : > { %1974 = vpush %v900_v54 }
 0x919   : > { %s1973_s9 = spop %1972 }
 0x91a   : > { %s885_s10 = smul.f32 0.00024414063, %s1973_s9 }
 0x91c   : > { %s905_s12 = smul.f32 %s885_s10, %s885_s10  ;;  %v922_v3 = vstv %s885_s10  ;;  %s2220_s10 = smov 126  }
 0x929   : > { %s1975_s13 = spop %1974 }
 0x92a   : > { %s904_s11 = smul.f32 0.00024414063, %s1975_s13 }
 0x92c   : > { %s906_s15 = ssub.f32 %s904_s11, %s905_s12  ;;  %s2834_s11 = smov 1  }
 0x92e   : > { %s907_s17 = smax.f32 %s2210_s16, %s906_s15  ;;  %s1854_s15 = sld [smem:[#allocation2 + $0x81]] }
 0x92f   : > { %s908_s18 = sadd.f32 1e-08, %s907_s17 }
 0x931   : > { %v909_v58 = vstv %s908_s18 }
 0x932   : > { %2117 = vrsqrt.f32 %v909_v58 }
 0x93c   : > { %v2118_v59 = vpop.eup %2117 }
 0x93d   : > { %1976 = vpush %v2118_v59 }
 0x96e   : > { %s1977_s29 = spop %1976 }
 0x96f   : > { %v917_v63 = vstv %s1977_s29 }
 0x970   : > { %v918_v2 = vmul.f32 %v1863_v60, %v917_v63  ;;  %v919_v0 = vmul.f32 %v1864_v61, %v917_v63  ;;  %v920_v6 = vmul.f32 %v1865_v62, %v917_v63  ;;  %v921_v9 = vmul.f32 %v1866_v1, %v917_v63 }
 0x972   : > { %v924_v10 = vmul.f32 %v922_v3, %v919_v0  ;;  %v923_v11 = vmul.f32 %v922_v3, %v918_v2  ;;  %v925_v12 = vmul.f32 %v922_v3, %v920_v6  ;;  %v926_v18 = vmul.f32 %v922_v3, %v921_v9 }
 0x974   : > { %933 = vrot.lane.b32.xlu1 %v924_v10, %s2834_s11  ;;  %931 = vrot.lane.b32.xlu0 %v923_v11, %s2834_s11 }
 0x978   : > { %935 = vrot.lane.b32.xlu1 %v925_v12, %s2834_s11  ;;  %937 = vrot.lane.b32.xlu0 %v926_v18, %s2834_s11 }
 0x97c   : > { %949 = vperm.xlu1 %2077, %v918_v2   ;;  %954 = vperm.xlu0 %2076, %v919_v0  }
 0x980   : > { %959 = vperm.xlu1 %2077, %v920_v6   ;;  %2078 = vset.pattern.permute.xlu0 %v2212_v14 }
 0x984   : > { %964 = vperm.xlu1 %2077, %v921_v9   ;;  %v1101_v9 = vstv %s1854_s15 }
 0x988   : > { %2079 = vset.pattern.permute.xlu1 %v2212_v14 }
 0x9e6   : > { %v934_v19 = vpop.permute.xlu1 %933  ;;  %v932_v20 = vpop.permute.xlu0 %931 }
 0x9e7   : > { %v944_v21 = vsub.f32 %v1864_v61, %v934_v19  ;;  %v943_v22 = vsub.f32 %v1863_v60, %v932_v20 }
 0x9e9   : > { %978 = vperm.xlu1 %2079, %v944_v21   ;;  %973 = vperm.xlu0 %2078, %v943_v22  }
 0x9ea   : > { %v936_v23 = vpop.permute.xlu1 %935  ;;  %v938_v24 = vpop.permute.xlu0 %937 }
 0x9eb   : > { %v945_v29 = vsub.f32 %v1865_v62, %v936_v23  ;;  %v946_v30 = vsub.f32 %v1866_v1, %v938_v24 }
 0x9ed   : > { %983 = vperm.xlu0 %2078, %v945_v29   ;;  %988 = vperm.xlu1 %2079, %v946_v30  }
 0x9f1   : > { %2080 = vset.pattern.permute.xlu0 %v2213_v26  ;;  %2081 = vset.pattern.permute.xlu1 %v2213_v26 }
 0x9f2   : > { %1010 = vperm.xlu0 %2080, %v1863_v60   ;;  %1015 = vperm.xlu1 %2081, %v1864_v61  }
 0x9f6   : > { %2085 = vset.pattern.permute.xlu0 %v2214_v27  ;;  %2082 = vset.pattern.permute.xlu1 %v2215_v28 }
 0x9f7   : > { %1074 = vperm.xlu0 %2085, %v1863_v60   ;;  %1037 = vperm.xlu1 %2082, %v1863_v60  }
 0x9fb   : > { %2086 = vset.pattern.permute.xlu0 %v2215_v28  ;;  %2083 = vset.pattern.permute.xlu1 %v2213_v26  ;;  %v950_v31 = vpop.permute.xlu1 %949  ;;  %v955_v34 = vpop.permute.xlu0 %954 }
 0x9fc   : > { %1041 = vperm.xlu0 %2086, %v1864_v61   ;;  %1020 = vperm.xlu1 %2083, %v1865_v62   ;;  %v967_v36 = vmul.f32 %v950_v31, %v2501_v4  ;;  %v968_v37 = vmul.f32 %v955_v34, %v2504_v5 }
 0x9ff   : > { %v960_v33 = vpop.permute.xlu1 %959 }
 0xa00   : > { %1049 = vperm.xlu0 %2086, %v1866_v1   ;;  %2084 = vset.pattern.permute.xlu1 %v2215_v28  ;;  %v969_v15 = vmul.f32 %v960_v33, %v2507_v7 }
 0xa01   : > { %1045 = vperm.xlu1 %2084, %v1865_v62  }
 0xa03   : > { %v965_v35 = vpop.permute.xlu1 %964 }
 0xa04   : > { %2091 = vset.pattern.permute.xlu0 %v2209_v57  ;;  %v970_v46 = vmul.f32 %v965_v35, %v2510_v8 }
 0xa05   : > { %2087 = vset.pattern.permute.xlu1 %v2214_v27 }
 0xa06   : > { %1078 = vperm.xlu1 %2087, %v1864_v61  }
 0xa0a   : > { %2088 = vset.pattern.permute.xlu1 %v2213_v26 }
 0xa0b   : > { %1025 = vperm.xlu1 %2088, %v1866_v1  }
 0xa0f   : > { %2089 = vset.pattern.permute.xlu1 %v2214_v27 }
 0xa10   : > { %1082 = vperm.xlu1 %2089, %v1865_v62  }
 0xa14   : > { %1086 = vperm.xlu1 %2089, %v1866_v1  }
 0xa18   : > { %2090 = vset.pattern.permute.xlu1 %v2209_v57 }
 0xa68   : > { %v979_v38 = vpop.permute.xlu1 %978  ;;  %v974_v39 = vpop.permute.xlu0 %973 }
 0xa69   : > { %v992_v40 = vadd.f32 %v979_v38, %v968_v37  ;;  %v991_v41 = vadd.f32 %v974_v39, %v967_v36 }
 0xa6b   : > { %997 = vrot.lane.b32.xlu0 %v992_v40, %s2219_s14  ;;  %995 = vrot.lane.b32.xlu1 %v991_v41, %s2219_s14 }
 0xa6c   : > { %v984_v17 = vpop.permute.xlu0 %983  ;;  %v989_v45 = vpop.permute.xlu1 %988 }
 0xa6d   : > { %v993_v44 = vadd.f32 %v984_v17, %v969_v15  ;;  %v994_v4 = vadd.f32 %v989_v45, %v970_v46 }
 0xa6f   : > { %1060 = vrot.lane.b32.xlu1 %v991_v41, %s2220_s10  ;;  %999 = vrot.lane.b32.xlu0 %v993_v44, %s2219_s14 }
 0xa71   : > { %v1016_v5 = vpop.permute.xlu1 %1015  ;;  %v1011_v42 = vpop.permute.xlu0 %1010 }
 0xa73   : > { %1001 = vrot.lane.b32.xlu1 %v994_v4, %s2219_s14  ;;  %1062 = vrot.lane.b32.xlu0 %v992_v40, %s2220_s10 }
 0xa76   : > { %v1038_v47 = vpop.permute.xlu1 %1037  ;;  %v1075_v43 = vpop.permute.xlu0 %1074 }
 0xa77   : > { %1066 = vrot.lane.b32.xlu1 %v994_v4, %s2220_s10  ;;  %1064 = vrot.lane.b32.xlu0 %v993_v44, %s2220_s10  ;;  %v1052_v60 = vmul.f32 %v1038_v47, %v991_v41 }
 0xa7b   : > { %v1021_v48 = vpop.permute.xlu1 %1020  ;;  %v1042_v16 = vpop.permute.xlu0 %1041 }
 0xa7c   : > { %v1053_v6 = vmul.f32 %v1042_v16, %v992_v40 }
 0xa7f   : > { %v1050_v8 = vpop.permute.xlu0 %1049 }
 0xa80   : > { %v1046_v7 = vpop.permute.xlu1 %1045  ;;  %v1055_v29 = vmul.f32 %v1050_v8, %v994_v4 }
 0xa81   : > { %v1054_v30 = vmul.f32 %v1046_v7, %v993_v44 }
 0xa85   : > { %v1079_v32 = vpop.permute.xlu1 %1078 }
 0xa8a   : > { %v1026_v13 = vpop.permute.xlu1 %1025 }
 0xa8f   : > { %v1083_v49 = vpop.permute.xlu1 %1082 }
 0xa93   : > { %v1087_v50 = vpop.permute.xlu1 %1086 }
 0xadd   : > { %v996_v51 = vpop.permute.xlu1 %995  ;;  %v998_v52 = vpop.permute.xlu0 %997 }
 0xade   : > { %v1004_v54 = vsel %vm1003_vm3, %v996_v51, 0.0  ;;  %v1005_v59 = vsel %vm1003_vm3, %v998_v52, 0.0 }
 0xadf   : > { %v1028_v58 = vmul.f32 %v1011_v42, %v1004_v54  ;;  %v1029_v1 = vmul.f32 %v1016_v5, %v1005_v59 }
 0xae1   : > { %v1061_v61 = vpop.permute.xlu1 %1060  ;;  %v1000_v62 = vpop.permute.xlu0 %999  ;;  %v1056_v2 = vadd.f32 %v1052_v60, %v1028_v58  ;;  %v1057_v18 = vadd.f32 %v1053_v6, %v1029_v1 }
 0xae2   : > { %v1069_v63 = vsel %vm1068_vm4, %v1061_v61, 0.0  ;;  %v1006_v3 = vsel %vm1003_vm3, %v1000_v62, 0.0 }
 0xae3   : > { %v1089_v0 = vmul.f32 %v1075_v43, %v1069_v63  ;;  %v1030_v19 = vmul.f32 %v1021_v48, %v1006_v3 }
 0xae5   : > { %v1093_v10 = vadd.f32 %v1089_v0, %v1056_v2  ;;  %v1002_v11 = vpop.permute.xlu1 %1001  ;;  %v1063_v12 = vpop.permute.xlu0 %1062  ;;  %v1058_v36 = vadd.f32 %v1054_v30, %v1030_v19 }
 0xae6   : > { %v1007_v20 = vsel %vm1003_vm3, %v1002_v11, 0.0  ;;  %v1070_v21 = vsel %vm1068_vm4, %v1063_v12, 0.0 }
 0xae7   : > { %v1031_v22 = vmul.f32 %v1026_v13, %v1007_v20  ;;  %v1090_v23 = vmul.f32 %v1079_v32, %v1070_v21  ;;  %vm1097_vm6 = vcmp.ge.f32.partialorder %v1093_v10, 0.0  ;;  %v1102_v24 = vmul.f32 %v1101_v9, %v1093_v10 }
 0xae9   : > { %v1094_v31 = vadd.f32 %v1090_v23, %v1057_v18  ;;  %v1067_v33 = vpop.permute.xlu1 %1066  ;;  %v1065_v34 = vpop.permute.xlu0 %1064  ;;  %v2578_v35 = vsel %vm1097_vm6, %v1093_v10, %v1102_v24  ;;  %v1059_v37 = vadd.f32 %v1055_v29, %v1031_v22 }
 0xaea   : > { %v1072_v38 = vsel %vm1068_vm4, %v1067_v33, 0.0  ;;  %v1071_v39 = vsel %vm1068_vm4, %v1065_v34, 0.0  ;;  %1114 = vadd.xlane.f32.xlu0 %v2578_v35  ;;  %v1110_v32 = vmul.f32 %v2578_v35, %v2578_v35 }
 0xaeb   : > { %v1092_v40 = vmul.f32 %v1087_v50, %v1072_v38  ;;  %v1091_v41 = vmul.f32 %v1083_v49, %v1071_v39  ;;  %vm1098_vm7 = vcmp.ge.f32.partialorder %v1094_v31, 0.0  ;;  %v1103_v15 = vmul.f32 %v1101_v9, %v1094_v31 }
 0xaed   : > { %v1096_v17 = vadd.f32 %v1092_v40, %v1059_v37  ;;  %v1095_v44 = vadd.f32 %v1091_v41, %v1058_v36  ;;  %v2585_v45 = vsel %vm1098_vm7, %v1094_v31, %v1103_v15  ;;  %v1869_v36 = vld [vmem:[%s2825_s5 + $0x10] sm:$0xff]  ;;  %v1870_v37 = vld [vmem:[%s2825_s5 + $0x18] sm:$0xff] }
 0xaee   : > { %1116 = vadd.xlane.f32.xlu1 %v2585_v45  ;;  %v1111_v4 = vmul.f32 %v2585_v45, %v2585_v45 }
 0xaef   : > { %vm1099_vm8 = vcmp.ge.f32.partialorder %v1095_v44, 0.0  ;;  %v1104_v46 = vmul.f32 %v1101_v9, %v1095_v44  ;;  %v1105_v47 = vmul.f32 %v1101_v9, %v1096_v17  ;;  %vm1100_vm9 = vcmp.ge.f32.partialorder %v1096_v17, 0.0 }
 0xaf1   : > { %v2590_v5 = vsel %vm1099_vm8, %v1095_v44, %v1104_v46  ;;  %v2595_v7 = vsel %vm1100_vm9, %v1096_v17, %v1105_v47 }
 0xaf2   : > { %1124 = vadd.xlane.f32.xlu1 %v1111_v4  ;;  %1118 = vadd.xlane.f32.xlu0 %v2590_v5  ;;  %v1112_v48 = vmul.f32 %v2590_v5, %v2590_v5  ;;  %v1113_v42 = vmul.f32 %v2595_v7, %v2595_v7 }
 0xaf6   : > { %1120 = vadd.xlane.f32.xlu0 %v2595_v7  ;;  %1126 = vadd.xlane.f32.xlu1 %v1112_v48 }
 0xafa   : > { %1122 = vadd.xlane.f32.xlu0 %v1110_v32 }
 0xafe   : > { %1128 = vadd.xlane.f32.xlu0 %v1113_v42 }
 0xb77   : > { %v1115_v13 = vpop.xlane.xlu0 %1114 }
 0xb78   : > { %v1130_v50 = vsel %vm375_vm5, %v1115_v13, 0.0 }
 0xb7b   : > { %v1117_v43 = vpop.xlane.xlu1 %1116 }
 0xb7c   : > { %v1131_v49 = vsel %vm375_vm5, %v1117_v43, 0.0 }
 0xb7d   : > { %v1132_v51 = vadd.f32 %v1131_v49, %v1130_v50 }
 0xb7f   : > { %v1119_v16 = vpop.xlane.xlu0 %1118  ;;  %v1125_v52 = vpop.xlane.xlu1 %1124 }
 0xb80   : > { %v1133_v8 = vsel %vm375_vm5, %v1119_v16, 0.0  ;;  %v1150_v1 = vsel %vm375_vm5, %v1125_v52, 0.0 }
 0xb81   : > { %v1134_v54 = vadd.f32 %v1133_v8, %v1132_v51 }
 0xb83   : > { %v1121_v58 = vpop.xlane.xlu0 %1120  ;;  %v1127_v61 = vpop.xlane.xlu1 %1126 }
 0xb84   : > { %v1135_v59 = vsel %vm375_vm5, %v1121_v58, 0.0  ;;  %v1152_v0 = vsel %vm375_vm5, %v1127_v61, 0.0 }
 0xb85   : > { %v1136_v60 = vadd.f32 %v1135_v59, %v1134_v54  ;;  %v2111_v59 = vld [vmem:[%s2822_s2 + $0x28] sm:$0xff]  }
 0xb87   : > { %1137 = vadd.xlane.f32.xlu1 %v1136_v60  ;;  %v1123_v62 = vpop.xlane.xlu0 %1122 }
 0xb88   : > { %v1149_v63 = vsel %vm375_vm5, %v1123_v62, 0.0 }
 0xb89   : > { %v1151_v2 = vadd.f32 %v1150_v1, %v1149_v63 }
 0xb8b   : > { %v1129_v3 = vpop.xlane.xlu0 %1128  ;;  %v1153_v6 = vadd.f32 %v1152_v0, %v1151_v2 }
 0xb8c   : > { %v1154_v9 = vsel %vm375_vm5, %v1129_v3, 0.0 }
 0xb8d   : > { %v1155_v10 = vadd.f32 %v1154_v9, %v1153_v6 }
 0xb8f   : > { %1156 = vadd.xlane.f32.xlu0 %v1155_v10 }
 0xb98   : > { %1195 = vperm.xlu1 %2090, %v1869_v36  }
 0xba5   : > { %1200 = vperm.xlu0 %2091, %v1870_v37  }
 0xc14   : > { %v1138_v11 = vpop.xlane.xlu1 %1137 }
 0xc15   : > { %v1139_v12 = vrot.slane %v1138_v11, 4 }
 0xc17   : > { %v1140_v18 = vadd.f32 %v1139_v12, %v1138_v11 }
 0xc19   : > { %v1141_v19 = vrot.slane %v1140_v18, 2 }
 0xc1b   : > { %v1142_v20 = vadd.f32 %v1141_v19, %v1140_v18 }
 0xc1c   : > { %v1157_v21 = vpop.xlane.xlu0 %1156 }
 0xc1d   : > { %v1158_v22 = vrot.slane %v1157_v21, 4  ;;  %v1143_v23 = vrot.slane %v1142_v20, 1 }
 0xc1f   : > { %v1159_v24 = vadd.f32 %v1158_v22, %v1157_v21  ;;  %v1144_v29 = vadd.f32 %v1143_v23, %v1142_v20 }
 0xc21   : > { %v1160_v30 = vrot.slane %v1159_v24, 2  ;;  %1978 = vpush %v1144_v29 }
 0xc23   : > { %v1161_v31 = vadd.f32 %v1160_v30, %v1159_v24 }
 0xc24   : > { %v1201_v43 = vpop.permute.xlu0 %1200 }
 0xc25   : > { %v1162_v33 = vrot.slane %v1161_v31, 1 }
 0xc27   : > { %v1163_v34 = vadd.f32 %v1162_v33, %v1161_v31 }
 0xc29   : > { %1980 = vpush %v1163_v34 }
 0xc52   : > { %s1979_s26 = spop %1978 }
 0xc53   : > { %s1148_s28 = smul.f32 0.00024414063, %s1979_s26 }
 0xc55   : > { %s1168_s29 = smul.f32 %s1148_s28, %s1148_s28  ;;  %v1175_v40 = vstv %s1148_s28 }
 0xc56   : > { %v1176_v41 = vsub.f32 %v2578_v35, %v1175_v40  ;;  %v1177_v15 = vsub.f32 %v2585_v45, %v1175_v40  ;;  %v1178_v44 = vsub.f32 %v2590_v5, %v1175_v40  ;;  %v1179_v46 = vsub.f32 %v2595_v7, %v1175_v40  ;;  %v2109_v35 = vld [vmem:[%s2823_s3 + $0x8] sm:$0xff]   ;;  %v2110_v45 = vld [vmem:[%s2822_s2 + $0x20] sm:$0xff]   ;;  %v1196_v5 = vpop.permute.xlu1 %1195 }
 0xc57   : > { %1948 = vmatprep.mubr.msk.bf16.mxu0 %vm286_vm0, %v2110_v45 }
 0xc5a   : > { %s1981_s9 = spop %1980 }
 0xc5b   : > { %s1167_s12 = smul.f32 0.00024414063, %s1981_s9 }
 0xc5d   : > { %s1169_s13 = ssub.f32 %s1167_s12, %s1168_s29  ;;  %s1873_s29 = sld [smem:[#allocation2 + $0x100]] }
 0xc5f   : > { %s1170_s14 = smax.f32 %s2210_s16, %s1169_s13 }
 0xc60   : > { %s1171_s10 = sadd.f32 1e-08, %s1170_s14 }
 0xc62   : > { %v1172_v38 = vstv %s1171_s10 }
 0xc63   : > { %2119 = vrsqrt.f32 %v1172_v38  ;;  %v1331_v60 = vstv %s1873_s29 }
 0xc6d   : > { %v2120_v39 = vpop.eup %2119 }
 0xc6e   : > { %1982 = vpush %v2120_v39 }
 0xc9f   : > { %s1983_s15 = spop %1982 }
 0xca0   : > { %v1180_v17 = vstv %s1983_s15 }
 0xca1   : > { %v1181_v4 = vmul.f32 %v1180_v17, %v1176_v41  ;;  %v1182_v47 = vmul.f32 %v1180_v17, %v1177_v15  ;;  %v1183_v48 = vmul.f32 %v1180_v17, %v1178_v44  ;;  %v1184_v32 = vmul.f32 %v1180_v17, %v1179_v46 }
 0xca3   : > { %v1185_v42 = vpack.c.bf16 %v1182_v47, %v1181_v4  ;;  %v1186_v13 = vpack.c.bf16 %v1184_v32, %v1183_v48 }
 0xca5   : > { %1939 = vmatpush3.bf16.msra.mxu1 %v1185_v42 }
 0xca6   : > { %1940 = vmatprep.subr.bf16.mxu1 %v2217_v25 }
 0xca9   : > { %1941 = vmatpush3.bf16.msra.mxu1 %v1186_v13 }
 0xcaa   : > { %1952 = vmatprep.subr.bf16.mxu1 %v2217_v25 }
 0xcac   : > { %1943 = vmatmul.mubr.msk.bf16.vlgmr.msra.gmra.mrb[4].mxu1 %vm714_vm13, %v2109_v35 }
 0xcad   : > { %1956 = vmatprep.mubr.msk.bf16.mxu1 %vm2218_vm12, %v2217_v25 }
 0xd7f   : > { %v1245_v7 = vpop.f32.mrb[4].mxu1 }
 0xd80   : > { %v1246_v49 = vadd.f32 %v1245_v7, %v1196_v5  ;;  %v1944_v16 = vpop.f32.mrb[5].mxu1 }
 0xd81   : > { %v1248_v50 = vpop.f32.mrb[6].mxu1 }
 0xd82   : > { %v1249_v8 = vadd.f32 %v1248_v50, %v1201_v43  ;;  %v1945_v51 = vpop.f32.mrb[7].mxu1  ;;  %v2634_v52 = vadd.f32 %v1246_v49, %v2490_v55 }
 0xd84   : > { %v2637_v54 = vadd.f32 %v1249_v8, %v2493_v56 }
 0xd86   : > { %v1261_v58 = vpack.c.bf16 %v2637_v54, %v2634_v52 }
 0xd88   : > { %1946 = vmatprep.subr.bf16.mxu0 %v1261_v58 }
 0xd89   : > { %1947 = vmatpush3.bf16.msra.mxu0 %v1261_v58 }
 0xd8c   : > { %1949 = vmatmul.mubr.msk.bf16.vlgmr.msra.gmra.mrb[8].mxu0 %vm286_vm0, %v2111_v59 }
 0xe5f   : > { %v1950_v61 = vpop.f32.mrb[8].mxu0 }
 0xe60   : > { %v1312_v62 = vpop.f32.mrb[9].mxu0  ;;  %v1334_v63 = vmul.f32 %v1950_v61, %v1331_v60  ;;  %vm1329_vm12 = vcmp.ge.f32.partialorder %v1950_v61, 0.0 }
 0xe61   : > { %vm1327_vm10 = vcmp.ge.f32.partialorder %v1312_v62, 0.0  ;;  %v1332_v55 = vmul.f32 %v1331_v60, %v1312_v62  ;;  %v1951_v1 = vpop.f32.mrb[10].mxu0 }
 0xe62   : > { %v1315_v56 = vpop.f32.mrb[11].mxu0  ;;  %v1335_v6 = vmul.f32 %v1951_v1, %v1331_v60  ;;  %v2651_v9 = vsel %vm1329_vm12, %v1950_v61, %v1334_v63  ;;  %vm1330_vm0 = vcmp.ge.f32.partialorder %v1951_v1, 0.0  ;;  %v1884_v61 = vld [vmem:[%s2824_s4 + $0x48] sm:$0xff] }
 0xe63   : > { %vm1328_vm11 = vcmp.ge.f32.partialorder %v1315_v56, 0.0  ;;  %v1333_v2 = vmul.f32 %v1331_v60, %v1315_v56  ;;  %v2645_v0 = vsel %vm1327_vm10, %v1312_v62, %v1332_v55  ;;  %v1342_v11 = vmul.f32 %v2651_v9, %v2651_v9  ;;  %v1883_v60 = vld [vmem:[%s2824_s4 + $0x40] sm:$0xff]  ;;  %v1885_v62 = vld [vmem:[%s2824_s4 + $0x50] sm:$0xff] }
 0xe64   : > { %1344 = vadd.xlane.f32.xlu1 %v2645_v0  ;;  %v2654_v10 = vsel %vm1330_vm0, %v1951_v1, %v1335_v6  ;;  %v1340_v12 = vmul.f32 %v2645_v0, %v2645_v0 }
 0xe65   : > { %v2648_v3 = vsel %vm1328_vm11, %v1315_v56, %v1333_v2  ;;  %v1343_v19 = vmul.f32 %v2654_v10, %v2654_v10 }
 0xe66   : > { %1346 = vadd.xlane.f32.xlu0 %v2648_v3  ;;  %v1341_v18 = vmul.f32 %v2648_v3, %v2648_v3 }
 0xe68   : > { %1348 = vadd.xlane.f32.xlu1 %v2651_v9 }
 0xe6c   : > { %1350 = vadd.xlane.f32.xlu1 %v2654_v10 }
 0xe70   : > { %1356 = vadd.xlane.f32.xlu1 %v1342_v11 }
 0xe74   : > { %1352 = vadd.xlane.f32.xlu1 %v1340_v12  ;;  %v1886_v12 = vld [vmem:[%s2824_s4 + $0x58] sm:$0xff] }
 0xe78   : > { %1354 = vadd.xlane.f32.xlu1 %v1341_v18 }
 0xe7c   : > { %1358 = vadd.xlane.f32.xlu1 %v1343_v19 }
 0xef1   : > { %v1345_v20 = vpop.xlane.xlu1 %1344 }
 0xef2   : > { %v1360_v22 = vsel %vm375_vm5, %v1345_v20, 0.0 }
 0xef3   : > { %v1347_v21 = vpop.xlane.xlu0 %1346 }
 0xef4   : > { %v1361_v23 = vsel %vm375_vm5, %v1347_v21, 0.0 }
 0xef5   : > { %v1362_v24 = vadd.f32 %v1361_v23, %v1360_v22  ;;  %v1349_v29 = vpop.xlane.xlu1 %1348 }
 0xef6   : > { %v1363_v30 = vsel %vm375_vm5, %v1349_v29, 0.0 }
 0xef7   : > { %v1364_v31 = vadd.f32 %v1363_v30, %v1362_v24 }
 0xef9   : > { %v1351_v33 = vpop.xlane.xlu1 %1350 }
 0xefa   : > { %v1365_v34 = vsel %vm375_vm5, %v1351_v33, 0.0 }
 0xefb   : > { %v1366_v36 = vadd.f32 %v1365_v34, %v1364_v31 }
 0xefd   : > { %v1357_v37 = vpop.xlane.xlu1 %1356  ;;  %1367 = vadd.xlane.f32.xlu0 %v1366_v36 }
 0xefe   : > { %v1382_v17 = vsel %vm375_vm5, %v1357_v37, 0.0 }
 0xf01   : > { %v1353_v38 = vpop.xlane.xlu1 %1352 }
 0xf02   : > { %v1379_v40 = vsel %vm375_vm5, %v1353_v38, 0.0 }
 0xf05   : > { %v1355_v39 = vpop.xlane.xlu1 %1354 }
 0xf06   : > { %v1380_v41 = vsel %vm375_vm5, %v1355_v39, 0.0 }
 0xf07   : > { %v1381_v15 = vadd.f32 %v1380_v41, %v1379_v40 }
 0xf09   : > { %v1383_v44 = vadd.f32 %v1382_v17, %v1381_v15  ;;  %v1359_v46 = vpop.xlane.xlu1 %1358 }
 0xf0a   : > { %v1384_v4 = vsel %vm375_vm5, %v1359_v46, 0.0 }
 0xf0b   : > { %v1385_v47 = vadd.f32 %v1384_v4, %v1383_v44 }
 0xf0d   : > { %1386 = vadd.xlane.f32.xlu1 %v1385_v47 }
 0xf8a   : > { %v1368_v48 = vpop.xlane.xlu0 %1367 }
 0xf8b   : > { %v1369_v32 = vrot.slane %v1368_v48, 4 }
 0xf8d   : > { %v1370_v42 = vadd.f32 %v1369_v32, %v1368_v48 }
 0xf8f   : > { %v1371_v13 = vrot.slane %v1370_v42, 2 }
 0xf91   : > { %v1372_v35 = vadd.f32 %v1371_v13, %v1370_v42 }
 0xf93   : > { %v1373_v45 = vrot.slane %v1372_v35, 1 }
 0xf95   : > { %v1374_v5 = vadd.f32 %v1373_v45, %v1372_v35 }
 0xf97   : > { %1984 = vpush %v1374_v5 }
 0xf9a   : > { %v1387_v7 = vpop.xlane.xlu1 %1386 }
 0xf9b   : > { %v1388_v43 = vrot.slane %v1387_v7, 4 }
 0xf9d   : > { %v1389_v49 = vadd.f32 %v1388_v43, %v1387_v7 }
 0xf9f   : > { %v1390_v16 = vrot.slane %v1389_v49, 2 }
 0xfa1   : > { %v1391_v50 = vadd.f32 %v1390_v16, %v1389_v49 }
 0xfa3   : > { %v1392_v8 = vrot.slane %v1391_v50, 1 }
 0xfa5   : > { %v1393_v51 = vadd.f32 %v1392_v8, %v1391_v50 }
 0xfa7   : > { %1986 = vpush %v1393_v51 }
 0xfc8   : > { %s1985_s9 = spop %1984 }
 0xfc9   : > { %s1378_s12 = smul.f32 0.00024414063, %s1985_s9 }
 0xfcb   : > { %s1398_s13 = smul.f32 %s1378_s12, %s1378_s12  ;;  %v1415_v63 = vstv %s1378_s12  ;;  %s1874_s12 = sld [smem:[#allocation2 + $0x101]] }
 0xfd8   : > { %s1987_s14 = spop %1986 }
 0xfd9   : > { %s1397_s10 = smul.f32 0.00024414063, %s1987_s14 }
 0xfdb   : > { %s1399_s15 = ssub.f32 %s1397_s10, %s1398_s13 }
 0xfdd   : > { %s1400_s17 = smax.f32 %s2210_s16, %s1399_s15 }
 0xfde   : > { %s1401_s18 = sadd.f32 1e-08, %s1400_s17 }
 0xfe0   : > { %v1402_v58 = vstv %s1401_s18  ;;  %s1899_s18 = sshll.u32 %s2282_s25, 8 }
 0xfe1   : > { %2121 = vrsqrt.f32 %v1402_v58 }
 0xfeb   : > { %v2122_v59 = vpop.eup %2121 }
 0xfec   : > { %1988 = vpush %v2122_v59 }
0x101d   : > { %s1989_s29 = spop %1988 }
0x101e   : > { %v1410_v55 = vstv %s1989_s29 }
0x101f   : > { %v1411_v1 = vmul.f32 %v1883_v60, %v1410_v55  ;;  %v1412_v56 = vmul.f32 %v1884_v61, %v1410_v55  ;;  %v1413_v2 = vmul.f32 %v1885_v62, %v1410_v55  ;;  %v1414_v18 = vmul.f32 %v1886_v12, %v1410_v55 }
0x1021   : > { %v1417_v6 = vmul.f32 %v1415_v63, %v1412_v56  ;;  %v1416_v11 = vmul.f32 %v1415_v63, %v1411_v1  ;;  %v1418_v19 = vmul.f32 %v1415_v63, %v1413_v2  ;;  %v1419_v20 = vmul.f32 %v1415_v63, %v1414_v18 }
0x1023   : > { %1426 = vrot.lane.b32.xlu1 %v1417_v6, %s2834_s11  ;;  %1424 = vrot.lane.b32.xlu0 %v1416_v11, %s2834_s11 }
0x1027   : > { %1428 = vrot.lane.b32.xlu1 %v1418_v19, %s2834_s11  ;;  %1442 = vperm.xlu0 %2091, %v1411_v1   ;;  %v1594_v1 = vstv %s1874_s12  ;;  %s256_s12 = sand.u32 1, %s2198_s22  }
0x1028   : > { %s1843_s10 = sshll.u32 %s256_s12, 4  ;;  %s2779_s25 = scalar_lea.sflag [#allocation3], %s256_s12 }
0x1029   : > { %s258_s15 = scalar_lea.vmem [#allocation5], %s1843_s10 }
0x102a   : > { %s1763_s17 = sshll.u32 %s258_s15, 4  ;;  %s2771_s17 = int_to_ptr.vmem [resolvable:$true] %s1763_s17 }
0x102b   : > { %1430 = vrot.lane.b32.xlu1 %v1419_v20, %s2834_s11  ;;  %1452 = vperm.xlu0 %2091, %v1413_v2   ;;  %s2222_s11 = smov 124  }
0x102f   : > { %1447 = vperm.xlu1 %2090, %v1412_v56   ;;  %2093 = vset.pattern.permute.xlu0 %v2212_v14 }
0x1033   : > { %1457 = vperm.xlu1 %2090, %v1414_v18  }
0x1037   : > { %2092 = vset.pattern.permute.xlu1 %v2212_v14 }
0x1095   : > { %v1427_v21 = vpop.permute.xlu1 %1426  ;;  %v1425_v22 = vpop.permute.xlu0 %1424 }
0x1096   : > { %v1437_v23 = vsub.f32 %v1884_v61, %v1427_v21  ;;  %v1436_v24 = vsub.f32 %v1883_v60, %v1425_v22 }
0x1098   : > { %1471 = vperm.xlu0 %2093, %v1437_v23   ;;  %1466 = vperm.xlu1 %2092, %v1436_v24  }
0x1099   : > { %v1429_v29 = vpop.permute.xlu1 %1428 }
0x109a   : > { %v1438_v30 = vsub.f32 %v1885_v62, %v1429_v29 }
0x109c   : > { %1476 = vperm.xlu1 %2092, %v1438_v30  }
0x109d   : > { %v1431_v31 = vpop.permute.xlu1 %1430 }
0x109e   : > { %v1439_v33 = vsub.f32 %v1886_v12, %v1431_v31 }
0x10a0   : > { %1481 = vperm.xlu0 %2093, %v1439_v33   ;;  %2094 = vset.pattern.permute.xlu1 %v2213_v26 }
0x10a1   : > { %1503 = vperm.xlu1 %2094, %v1883_v60  }
0x10a4   : > { %2095 = vset.pattern.permute.xlu0 %v2213_v26 }
0x10a5   : > { %1508 = vperm.xlu0 %2095, %v1884_v61   ;;  %2096 = vset.pattern.permute.xlu1 %v2215_v28 }
0x10a6   : > { %1530 = vperm.xlu1 %2096, %v1883_v60   ;;  %v1443_v14 = vpop.permute.xlu0 %1442 }
0x10a9   : > { %1513 = vperm.xlu0 %2095, %v1885_v62  }
0x10aa   : > { %1534 = vperm.xlu1 %2096, %v1884_v61   ;;  %v1453_v36 = vpop.permute.xlu0 %1452 }
0x10ab   : > { %v1462_v15 = vmul.f32 %v1453_v36, %v2651_v9 }
0x10ad   : > { %2097 = vset.pattern.permute.xlu0 %v2214_v27 }
0x10ae   : > { %1567 = vperm.xlu0 %2097, %v1883_v60   ;;  %1538 = vperm.xlu1 %2096, %v1885_v62   ;;  %v1448_v34 = vpop.permute.xlu1 %1447 }
0x10af   : > { %v1461_v38 = vmul.f32 %v1448_v34, %v2648_v3 }
0x10b2   : > { %2100 = vset.pattern.permute.xlu0 %v2215_v28  ;;  %2098 = vset.pattern.permute.xlu1 %v2214_v27  ;;  %v1458_v37 = vpop.permute.xlu1 %1457  ;;  %v1460_v28 = vmul.f32 %v1443_v14, %v2645_v0 }
0x10b3   : > { %1542 = vperm.xlu0 %2100, %v1886_v12   ;;  %1571 = vperm.xlu1 %2098, %v1884_v61  }
0x10b7   : > { %2099 = vset.pattern.permute.xlu1 %v2213_v26  ;;  %2102 = vset.pattern.permute.xlu0 %v2209_v57 }
0x10b8   : > { %1518 = vperm.xlu1 %2099, %v1886_v12  }
0x10bc   : > { %2101 = vset.pattern.permute.xlu1 %v2214_v27 }
0x10bd   : > { %1575 = vperm.xlu1 %2101, %v1885_v62  }
0x10c1   : > { %1579 = vperm.xlu1 %2101, %v1886_v12  }
0x10c5   : > { %2103 = vset.pattern.permute.xlu1 %v2209_v57  ;;  %v1463_v57 = vmul.f32 %v1458_v37, %v2654_v10 }
0x1117   : > { %v1467_v39 = vpop.permute.xlu1 %1466  ;;  %v1472_v40 = vpop.permute.xlu0 %1471 }
0x1118   : > { %v1484_v26 = vadd.f32 %v1467_v39, %v1460_v28  ;;  %v1485_v41 = vadd.f32 %v1472_v40, %v1461_v38 }
0x111a   : > { %1488 = vrot.lane.b32.xlu1 %v1484_v26, %s2221_s0  ;;  %1490 = vrot.lane.b32.xlu0 %v1485_v41, %s2221_s0 }
0x111b   : > { %v1477_v27 = vpop.permute.xlu1 %1476 }
0x111c   : > { %v1486_v17 = vadd.f32 %v1477_v27, %v1462_v15 }
0x111e   : > { %1553 = vrot.lane.b32.xlu1 %v1484_v26, %s2222_s11  ;;  %1492 = vrot.lane.b32.xlu0 %v1486_v17, %s2221_s0 }
0x111f   : > { %v1482_v44 = vpop.permute.xlu0 %1481 }
0x1120   : > { %v1487_v0 = vadd.f32 %v1482_v44, %v1463_v57  ;;  %v1504_v3 = vpop.permute.xlu1 %1503 }
0x1122   : > { %1555 = vrot.lane.b32.xlu0 %v1485_v41, %s2222_s11  ;;  %1494 = vrot.lane.b32.xlu1 %v1487_v0, %s2221_s0 }
0x1124   : > { %v1509_v48 = vpop.permute.xlu0 %1508 }
0x1125   : > { %v1531_v46 = vpop.permute.xlu1 %1530 }
0x1126   : > { %1557 = vrot.lane.b32.xlu0 %v1486_v17, %s2222_s11  ;;  %1559 = vrot.lane.b32.xlu1 %v1487_v0, %s2222_s11  ;;  %v1545_v50 = vmul.f32 %v1531_v46, %v1484_v26 }
0x1128   : > { %v1514_v42 = vpop.permute.xlu0 %1513 }
0x1129   : > { %v1535_v4 = vpop.permute.xlu1 %1534 }
0x112a   : > { %v1546_v55 = vmul.f32 %v1535_v4, %v1485_v41 }
0x112d   : > { %v1539_v9 = vpop.permute.xlu1 %1538  ;;  %v1568_v35 = vpop.permute.xlu0 %1567 }
0x112e   : > { %v1547_v22 = vmul.f32 %v1539_v9, %v1486_v17 }
0x1132   : > { %v1572_v47 = vpop.permute.xlu1 %1571  ;;  %v1543_v45 = vpop.permute.xlu0 %1542 }
0x1133   : > { %v1548_v23 = vmul.f32 %v1543_v45, %v1487_v0 }
0x1137   : > { %v1519_v32 = vpop.permute.xlu1 %1518 }
0x113c   : > { %v1576_v13 = vpop.permute.xlu1 %1575 }
0x1140   : > { %v1580_v10 = vpop.permute.xlu1 %1579 }
0x118c   : > { %v1489_v5 = vpop.permute.xlu1 %1488  ;;  %v1491_v7 = vpop.permute.xlu0 %1490 }
0x118d   : > { %v1497_v43 = vsel %vm1496_vm14, %v1489_v5, 0.0  ;;  %v1498_v16 = vsel %vm1496_vm14, %v1491_v7, 0.0 }
0x118e   : > { %v1521_v49 = vmul.f32 %v1504_v3, %v1497_v43  ;;  %v1522_v58 = vmul.f32 %v1509_v48, %v1498_v16 }
0x1190   : > { %v1554_v8 = vpop.permute.xlu1 %1553  ;;  %v1493_v51 = vpop.permute.xlu0 %1492  ;;  %v1549_v60 = vadd.f32 %v1545_v50, %v1521_v49  ;;  %v1550_v6 = vadd.f32 %v1546_v55, %v1522_v58 }
0x1191   : > { %v1562_v59 = vsel %vm1561_vm15, %v1554_v8, 0.0  ;;  %v1499_v62 = vsel %vm1496_vm14, %v1493_v51, 0.0 }
0x1192   : > { %v1582_v61 = vmul.f32 %v1568_v35, %v1562_v59  ;;  %v1523_v11 = vmul.f32 %v1514_v42, %v1499_v62 }
0x1194   : > { %v1586_v56 = vadd.f32 %v1582_v61, %v1549_v60  ;;  %v1495_v63 = vpop.permute.xlu1 %1494  ;;  %v1556_v2 = vpop.permute.xlu0 %1555  ;;  %v1551_v33 = vadd.f32 %v1547_v22, %v1523_v11  ;;  %v1890_v22 = vld [vmem:[%s2825_s5 + $0x28] sm:$0xff] }
0x1195   : > { %v1500_v12 = vsel %vm1496_vm14, %v1495_v63, 0.0  ;;  %v1563_v18 = vsel %vm1561_vm15, %v1556_v2, 0.0 }
0x1196   : > { %v1524_v19 = vmul.f32 %v1519_v32, %v1500_v12  ;;  %v1583_v20 = vmul.f32 %v1572_v47, %v1563_v18  ;;  %vm1590_vm1 = vcmp.ge.f32.partialorder %v1586_v56, 0.0  ;;  %v1595_v21 = vmul.f32 %v1594_v1, %v1586_v56 }
0x1198   : > { %v1587_v24 = vadd.f32 %v1583_v20, %v1550_v6  ;;  %v1560_v29 = vpop.permute.xlu1 %1559  ;;  %v1558_v30 = vpop.permute.xlu0 %1557  ;;  %v2720_v31 = vsel %vm1590_vm1, %v1586_v56, %v1595_v21  ;;  %v1552_v14 = vadd.f32 %v1548_v23, %v1524_v19  ;;  %v1889_v21 = vld [vmem:[%s2825_s5 + $0x20] sm:$0xff] }
0x1199   : > { %v1565_v34 = vsel %vm1561_vm15, %v1560_v29, 0.0  ;;  %v1564_v36 = vsel %vm1561_vm15, %v1558_v30, 0.0  ;;  %1607 = vadd.xlane.f32.xlu0 %v2720_v31  ;;  %v1603_v57 = vmul.f32 %v2720_v31, %v2720_v31 }
0x119a   : > { %v1585_v37 = vmul.f32 %v1580_v10, %v1565_v34  ;;  %v1584_v28 = vmul.f32 %v1576_v13, %v1564_v36  ;;  %vm1591_vm2 = vcmp.ge.f32.partialorder %v1587_v24, 0.0  ;;  %v1596_v38 = vmul.f32 %v1594_v1, %v1587_v24 }
0x119c   : > { %v1589_v39 = vadd.f32 %v1585_v37, %v1552_v14  ;;  %v1588_v40 = vadd.f32 %v1584_v28, %v1551_v33  ;;  %v2727_v26 = vsel %vm1591_vm2, %v1587_v24, %v1596_v38 }
0x119d   : > { %1609 = vadd.xlane.f32.xlu1 %v2727_v26  ;;  %v1604_v44 = vmul.f32 %v2727_v26, %v2727_v26 }
0x119e   : > { %vm1593_vm3 = vcmp.ge.f32.partialorder %v1589_v39, 0.0  ;;  %v1598_v41 = vmul.f32 %v1594_v1, %v1589_v39  ;;  %vm1592_vm4 = vcmp.ge.f32.partialorder %v1588_v40, 0.0  ;;  %v1597_v15 = vmul.f32 %v1594_v1, %v1588_v40 }
0x11a0   : > { %v2730_v27 = vsel %vm1593_vm3, %v1589_v39, %v1598_v41  ;;  %v2732_v53 = vsel %vm1592_vm4, %v1588_v40, %v1597_v15 }
0x11a1   : > { %1613 = vadd.xlane.f32.xlu1 %v2730_v27  ;;  %1611 = vadd.xlane.f32.xlu0 %v2732_v53  ;;  %v1606_v17 = vmul.f32 %v2730_v27, %v2730_v27  ;;  %v1605_v0 = vmul.f32 %v2732_v53, %v2732_v53 }
0x11a5   : > { %1621 = vadd.xlane.f32.xlu1 %v1606_v17  ;;  %1615 = vadd.xlane.f32.xlu0 %v1603_v57 }
0x11a9   : > { %1617 = vadd.xlane.f32.xlu0 %v1604_v44 }
0x11ad   : > { %1619 = vadd.xlane.f32.xlu0 %v1605_v0 }
0x1226   : > { %v1608_v3 = vpop.xlane.xlu0 %1607 }
0x1227   : > { %v1623_v9 = vsel %vm375_vm5, %v1608_v3, 0.0 }
0x122a   : > { %v1610_v46 = vpop.xlane.xlu1 %1609 }
0x122b   : > { %v1624_v4 = vsel %vm375_vm5, %v1610_v46, 0.0 }
0x122c   : > { %v1625_v47 = vadd.f32 %v1624_v4, %v1623_v9 }
0x122e   : > { %v1614_v48 = vpop.xlane.xlu1 %1613  ;;  %v1612_v32 = vpop.xlane.xlu0 %1611 }
0x122f   : > { %v1626_v42 = vsel %vm375_vm5, %v1612_v32, 0.0  ;;  %v1628_v35 = vsel %vm375_vm5, %v1614_v48, 0.0 }
0x1230   : > { %v1627_v13 = vadd.f32 %v1626_v42, %v1625_v47 }
0x1232   : > { %v1629_v10 = vadd.f32 %v1628_v35, %v1627_v13  ;;  %v1616_v45 = vpop.xlane.xlu0 %1615  ;;  %v1622_v49 = vpop.xlane.xlu1 %1621 }
0x1233   : > { %v1642_v43 = vsel %vm375_vm5, %v1616_v45, 0.0  ;;  %v1647_v58 = vsel %vm375_vm5, %v1622_v49, 0.0 }
0x1234   : > { %1630 = vadd.xlane.f32.xlu0 %v1629_v10 }
0x1236   : > { %v1618_v5 = vpop.xlane.xlu0 %1617 }
0x1237   : > { %v1643_v7 = vsel %vm375_vm5, %v1618_v5, 0.0 }
0x1238   : > { %v1644_v16 = vadd.f32 %v1643_v7, %v1642_v43 }
0x123a   : > { %v1620_v50 = vpop.xlane.xlu0 %1619 }
0x123b   : > { %v1645_v8 = vsel %vm375_vm5, %v1620_v50, 0.0 }
0x123c   : > { %v1646_v51 = vadd.f32 %v1645_v8, %v1644_v16 }
0x123e   : > { %v1648_v59 = vadd.f32 %v1647_v58, %v1646_v51 }
0x1240   : > { %1649 = vadd.xlane.f32.xlu1 %v1648_v59 }
0x124a   : > { %1688 = vperm.xlu0 %2102, %v1889_v21  }
0x1251   : > { %1693 = vperm.xlu1 %2103, %v1890_v22  }
0x12c1   : > { %v1631_v60 = vpop.xlane.xlu0 %1630 }
0x12c2   : > { %v1632_v61 = vrot.slane %v1631_v60, 4 }
0x12c4   : > { %v1633_v62 = vadd.f32 %v1632_v61, %v1631_v60 }
0x12c6   : > { %v1634_v55 = vrot.slane %v1633_v62, 2 }
0x12c8   : > { %v1635_v1 = vadd.f32 %v1634_v55, %v1633_v62 }
0x12ca   : > { %v1636_v56 = vrot.slane %v1635_v1, 1 }
0x12cc   : > { %v1637_v63 = vadd.f32 %v1636_v56, %v1635_v1 }
0x12cd   : > { %v1650_v2 = vpop.xlane.xlu1 %1649 }
0x12ce   : > { %v1651_v6 = vrot.slane %v1650_v2, 4  ;;  %1990 = vpush %v1637_v63 }
0x12d0   : > { %v1652_v11 = vadd.f32 %v1651_v6, %v1650_v2 }
0x12d2   : > { %v1653_v12 = vrot.slane %v1652_v11, 2 }
0x12d4   : > { %v1654_v18 = vadd.f32 %v1653_v12, %v1652_v11 }
0x12d6   : > { %v1655_v19 = vrot.slane %v1654_v18, 1 }
0x12d8   : > { %v1656_v20 = vadd.f32 %v1655_v19, %v1654_v18 }
0x12da   : > { %1992 = vpush %v1656_v20 }
0x12ff   : > { %s1991_s19 = spop %1990 }
0x1300   : > { %s1641_s20 = smul.f32 0.00024414063, %s1991_s19 }
0x1302   : > { %s1661_s26 = smul.f32 %s1641_s20, %s1641_s20  ;;  %v1668_v29 = vstv %s1641_s20 }
0x1303   : > { %v1669_v30 = vsub.f32 %v2720_v31, %v1668_v29  ;;  %v1670_v33 = vsub.f32 %v2727_v26, %v1668_v29  ;;  %v1671_v34 = vsub.f32 %v2732_v53, %v1668_v29  ;;  %v1672_v36 = vsub.f32 %v2730_v27, %v1668_v29  ;;  %v2112_v31 = vld [vmem:[%s2823_s3 + $0x10] sm:$0xff]   ;;  %v1689_v26 = vpop.permute.xlu0 %1688  ;;  %v1694_v27 = vpop.permute.xlu1 %1693 }
0x130b   : > { %s1993_s28 = spop %1992 }
0x130c   : > { %s1660_s29 = smul.f32 0.00024414063, %s1993_s28  ;;  %s2140_s28 = scalar_lea.vmem %s2771_s17, 256 }
0x130d   : > { %p2141_p9 = scmp.ne.s32.totalorder %s2771_s17, %s2140_s28 }
0x130e   : > { %s1662_s9 = ssub.f32 %s1660_s29, %s1661_s26  ;;  %s2776_s26 = scalar_lea.hbm %s2826_s6, %s1899_s18 }
0x130f   : > { %p2142_p10 = pnand %p2141_p9, %p2299_p5  ;;  %s2223_s29 = smov [#allocation5]  }
0x1310   : > { %s1663_s13 = smax.f32 %s2210_s16, %s1662_s9  ;;  %s2144_s9 = sshll.u32 %s2223_s29, 4  ;;  %s2145_s9 = int_to_ptr.vmem [resolvable:$false] %s2144_s9 }
0x1311   : > { %s1664_s14 = sadd.f32 1e-08, %s1663_s13  ;;  %p2143_p12 = pneg %p2142_p10 }
0x1312   : > { %s2146_s13 = scalar_lea.vmem %s2145_s9, 512  ;;  %p2147_p13 = scmp.lt.s32.totalorder %s2771_s17, %s2145_s9 }
0x1313   : > { %v1665_v23 = vstv %s1664_s14  ;;  %p2148_p0 = scmp.lt.s32.totalorder %s2146_s13, %s2140_s28 }
0x1314   : > { %2123 = vrsqrt.f32 %v1665_v23 }
0x1315   : > { %p2149_p1 = por %p2148_p0, %p2147_p13 }
0x1317   : > { %p2150_p2 = pnand %p2149_p1, %p2143_p12 }
0x131e   : > { %v2124_v24 = vpop.eup %2123 }
0x131f   : > { %1994 = vpush %v2124_v24 }
0x1350   : > { %s1995_s0 = spop %1994 }
0x1351   : > { %v1673_v14 = vstv %s1995_s0 }
0x1352   : > { %v1674_v37 = vmul.f32 %v1673_v14, %v1669_v30  ;;  %v1675_v28 = vmul.f32 %v1673_v14, %v1670_v33  ;;  %v1676_v38 = vmul.f32 %v1673_v14, %v1671_v34  ;;  %v1677_v39 = vmul.f32 %v1673_v14, %v1672_v36 }
0x1354   : > { %v1678_v40 = vpack.c.bf16 %v1675_v28, %v1674_v37  ;;  %v1679_v41 = vpack.c.bf16 %v1677_v39, %v1676_v38 }
0x1356   : > { %1953 = vmatpush3.bf16.msra.mxu1 %v1678_v40 }
0x1357   : > { %1954 = vmatprep.subr.bf16.mxu1 %v2217_v25 }
0x135a   : > { %1955 = vmatpush3.bf16.msra.mxu1 %v1679_v41 }
0x135d   : > { %1957 = vmatmul.mubr.msk.bf16.vlgmr.msra.gmra.mrb[8].mxu1 %vm714_vm13, %v2112_v31 }
0x1430   : > { %v1738_v15 = vpop.f32.mrb[8].mxu1 }
0x1431   : > { %v1739_v53 = vadd.f32 %v1738_v15, %v1689_v26  ;;  %v1958_v17 = vpop.f32.mrb[9].mxu1 }
0x1432   : > { %v1741_v25 = vpop.f32.mrb[10].mxu1 }
0x1433   : > { %v1745_v57 = vadd.f32 %v1739_v53, %v2634_v52  ;;  %v1742_v44 = vadd.f32 %v1741_v25, %v1694_v27  ;;  %v1959_v0 = vpop.f32.mrb[11].mxu1 }
0x1435   : > { %1747 = vst [vmem:[%s258_s15] sm:$0xff] %v1745_v57  ;;  %v1746_v3 = vadd.f32 %v1742_v44, %v2637_v54 }
0x1437   : > { %1748 = vst [vmem:[%s258_s15 + $0x8] sm:$0xff] %v1746_v3 }
0x1438   : > { %2153 = shalt.err (!%p2150_p2)
}
0x1439   : > { %s2154_s14 = scalar_lea.hbm %s2776_s26, 256  ;;  %s2158_s11 = scalar_lea.hbm %s2826_s6, 2048 }
0x143a   : > { %p2155_p3 = scmp.ne.s32.totalorder %s2776_s26, %s2154_s14  ;;  %p2159_p8 = scmp.lt.u32.totalorder %s2776_s26, %s2826_s6 }
0x143b   : > { %p2160_p11 = scmp.lt.u32.totalorder %s2158_s11, %s2154_s14  ;;  %p2162_p10 = scmp.lt.u32.totalorder %s2154_s14, %s2776_s26 }
0x143c   : > { %p2156_p4 = pnand %p2155_p3, %p2299_p5 }
0x143d   : > { %p2161_p9 = por %p2160_p11, %p2159_p8 }
0x143e   : > { %p2157_p7 = pneg %p2156_p4 }
0x143f   : > { %p2163_p12 = por %p2162_p10, %p2161_p9 }
0x1441   : > { %p2164_p13 = pnand %p2163_p12, %p2157_p7 }
0x1443   : > { %2167 = shalt.err (!%p2164_p13)
}
0x1444   : > { %s2224_s15 = smov 128   ;;  %s2225_s18 = smov 8  }
0x1445   : > { %2000 = dma.vmem_to_hbm [thread:$0]  (%p2299_p5), %s2771_s17, 256, %s2776_s26, %s2779_s25, %s2224_s15, %s2224_s15, %s2225_s18  }
0x1446 PF: > { %p2012_p0 = scmp.ge.s32.totalorder %s2206_s24, 2  ;;  %s1778_s19 = sand.u32 1, %s2194_s21  }
0x1447   : > { %s1779_s20 = scalar_lea.sflag [#allocation3], %s1778_s19 }
0x1448   : > { %p2007_p1 = pnand %p2012_p0, %p2303_p6 }
0x144a   : > { %2189 = dma.done.wait (!%p2007_p1), %s1779_s20, 256  }
0x144b   : > { %2191 = vsyncadd (!%p2007_p1), %s1779_s20, 4294967040  ;;  %p17_p2 = scmp.ge.s32.totalorder %s2286_s27, 10   ;;  %s2835_s21 = smov %s2198_s22 }
0x144c   : > { %s2836_s22 = smov %s2202_s23  ;;  %s2837_s23 = smov %s2297_s30 }
0x144d   : > { %s2838_s24 = smov %s2286_s27  ;;  %19 = sbr.rel (!%p17_p2) target bundleno = 6 (0x6), region = 92 }
0x1454   :  { %1784 = vsyncpa [#allocation3], 1 }
0x1455   :  { %1786 = vsyncpa [#allocation3 + $0x1], 1 }
0x1456   :  { %1787 = vsyncpa [#allocation4], 1 }
0x1457   :  { %1789 = vsyncpa [#allocation4 + $0x1], 1 }

</bundles_post_ra>
